<compile_context>
chip_gen: v7x
topology: tpu7x:2x2x1
jax: 0.10.0
libtpu: 0.0.40
codegen_flags: <defaults>
</compile_context>

<pallas_src>
import jax
import jax.numpy as jnp
from jax.experimental import pallas as pl
from jax.experimental.pallas import tpu as pltpu


def add_conv1x1_kernel(a_ref, b_ref, w_ref, o_ref):
    # a_ref, b_ref: [1, Cin, thw]   w_ref: [Cout, Cin]   o_ref: [1, Cout, thw]
    s = a_ref[0] + b_ref[0]                              # VPU add, [Cin, thw]
    o_ref[0] = jnp.dot(                                  # MXU, lane-dense out
        w_ref[...], s, preferred_element_type=jnp.float32
    ).astype(o_ref.dtype)


def add_conv2d_1x1(x_a, x_b, weight, *, hw_blocks=2):
    """Fused (x_a + x_b) -> 1x1 conv.

    x_a, x_b: [N, Cin, H, W] (NCHW); weight: [Cout, Cin, 1, 1] (PyTorch conv).
    hw_blocks: number of lane (H*W) blocks per image; 2 keeps both v7x
    TensorCores busy and enables DMA/compute overlap, 1 gives a single-step
    grid (fine on v5e/v6e).
    """
    N, Cin, H, W = x_a.shape
    Cout = weight.shape[0]
    HW = H * W

    # Pure reshapes (no data movement): NCHW -> [N, Cin, HW]
    a = x_a.reshape(N, Cin, HW)
    b = x_b.reshape(N, Cin, HW)
    w = weight.reshape(Cout, Cin)

    # Lane-tile selection: few, large, 128-aligned blocks.
    if HW <= 256 or hw_blocks <= 1:
        # Small feature maps (or explicit request): one full-dim block.
        # TODO(synk): for deep layers with HW < 128, fold N onto the lane axis
        # to keep lane-dense stores; irrelevant for the 56x56 case here.
        thw = HW
    else:
        # Smallest multiple of 128 covering HW in `hw_blocks` blocks.
        thw = ((pl.cdiv(HW, hw_blocks) + 127) // 128) * 128
        thw = min(thw, HW)
    n_hw = pl.cdiv(HW, thw)

    # HW tiles leading so they (not a possibly size-1 batch) get megacore-split.
    grid = (n_hw, N)

    cost = pl.CostEstimate(
        flops=2 * N * Cout * Cin * HW,
        transcendentals=0,
        bytes_accessed=(2 * N * Cin * HW + Cout * Cin + N * Cout * HW) * 4,
    )

    out = pl.pallas_call(
        add_conv1x1_kernel,
        out_shape=jax.ShapeDtypeStruct((N, Cout, HW), jnp.float32),
        grid=grid,
        in_specs=[
            pl.BlockSpec((1, Cin, thw), lambda j, n: (n, 0, j)),
            pl.BlockSpec((1, Cin, thw), lambda j, n: (n, 0, j)),
            # weight block stays resident across the whole grid
            pl.BlockSpec((Cout, Cin), lambda j, n: (0, 0)),
        ],
        out_specs=pl.BlockSpec((1, Cout, thw), lambda j, n: (n, 0, j)),
        compiler_params=pltpu.CompilerParams(
            dimension_semantics=("parallel", "parallel")
        ),
        cost_estimate=cost,
    )(a, b, w)

    # [N, Cout, HW] -> [N, Cout, H, W]  (pure reshape, still NCHW)
    return out.reshape(N, Cout, H, W)


if __name__ == "__main__":
    key = jax.random.PRNGKey(0)
    k1, k2, k3 = jax.random.split(key, 3)

    # Shapes from the module spec: x16, x24 = [1, 24, 56, 56]; Conv2d(24 -> 144).
    N, Cin, H, W = 1, 24, 56, 56
    Cout = 144

    x16 = jax.random.normal(k1, (N, Cin, H, W), dtype=jnp.float32)
    x24 = jax.random.normal(k2, (N, Cin, H, W), dtype=jnp.float32)
    # Deterministic synthetic Conv2d weight [Cout, Cin, 1, 1], bias=False.
    weight = jax.random.normal(k3, (Cout, Cin, 1, 1), dtype=jnp.float32) * 0.05

    out = add_conv2d_1x1(x16, x24, weight)
    jax.block_until_ready(out)

    # Reference in plain JAX (same semantics as torch add + 1x1 conv, no bias).
    ref = jnp.einsum("nchw,oc->nohw", x16 + x24, weight.reshape(Cout, Cin))
    assert out.shape == (N, Cout, H, W)
    assert jnp.allclose(out, ref, atol=1e-3, rtol=1e-3), float(
        jnp.max(jnp.abs(out - ref))
    )

    # Also exercise the single-block path.
    out1 = add_conv2d_1x1(x16, x24, weight, hw_blocks=1)
    jax.block_until_ready(out1)
    assert jnp.allclose(out1, ref, atol=1e-3, rtol=1e-3)

    print("KERNEL_OK")
</pallas_src>

<mosaic_0001>
module attributes {stable_mosaic.version = 11 : i64} {
  func.func @add_conv1x1_kernel(%arg0: i32, %arg1: i32, %arg2: memref<1x24x1664xf32, #tpu.memory_space<vmem>>, %arg3: memref<1x24x1664xf32, #tpu.memory_space<vmem>>, %arg4: memref<144x24xf32, #tpu.memory_space<vmem>>, %arg5: memref<1x144x1664xf32, #tpu.memory_space<vmem>>) attributes {dimension_semantics = [#tpu.dimension_semantics<parallel>, #tpu.dimension_semantics<parallel>], iteration_bounds = array<i64: 2, 1>, scalar_prefetch = 0 : i64, scratch_operands = 0 : i64, tpu.core_type = #tpu.core_type<tc>, window_params = [{transform_indices = @transform_0, window_bounds = array<i64: 1, 24, 1664>}, {transform_indices = @transform_1, window_bounds = array<i64: 1, 24, 1664>}, {pipeline_mode = #tpu.pipeline_mode<synchronous>, transform_indices = @transform_2, window_bounds = array<i64: 144, 24>}, {transform_indices = @transform_3, window_bounds = array<i64: 1, 144, 1664>}]} {
    %c0 = arith.constant 0 : index
    %c0_0 = arith.constant 0 : index
    %c0_1 = arith.constant 0 : index
    %0 = vector.load %arg2[%c0, %c0_0, %c0_1] : memref<1x24x1664xf32, #tpu.memory_space<vmem>>, vector<1x24x1664xf32>
    %1 = vector.shape_cast %0 : vector<1x24x1664xf32> to vector<24x1664xf32>
    %c0_2 = arith.constant 0 : index
    %c0_3 = arith.constant 0 : index
    %c0_4 = arith.constant 0 : index
    %2 = vector.load %arg3[%c0_2, %c0_3, %c0_4] : memref<1x24x1664xf32, #tpu.memory_space<vmem>>, vector<1x24x1664xf32>
    %3 = vector.shape_cast %2 : vector<1x24x1664xf32> to vector<24x1664xf32>
    %4 = arith.addf %1, %3 : vector<24x1664xf32>
    %c0_5 = arith.constant 0 : index
    %c0_6 = arith.constant 0 : index
    %5 = vector.load %arg4[%c0_5, %c0_6] : memref<144x24xf32, #tpu.memory_space<vmem>>, vector<144x24xf32>
    %cst = arith.constant dense<0.000000e+00> : vector<144x1664xf32>
    %6 = tpu.matmul %5, %4, %cst {dimension_numbers = #tpu.dot_dimension_numbers<[1], [0], [0], [1], [0, 0, 1, 1], [], []>} : vector<144x24xf32>, vector<24x1664xf32>, vector<144x1664xf32> -> vector<144x1664xf32>
    %c0_7 = arith.constant 0 : index
    %c0_8 = arith.constant 0 : index
    %c0_9 = arith.constant 0 : index
    %7 = vector.load %arg5[%c0_7, %c0_8, %c0_9] : memref<1x144x1664xf32, #tpu.memory_space<vmem>>, vector<1x144x1664xf32>
    %8 = vector.shape_cast %7 : vector<1x144x1664xf32> to vector<144x1664xf32>
    %9 = vector.shape_cast %6 : vector<144x1664xf32> to vector<1x144x1664xf32>
    tpu.vector_store %arg5[%c0_7, %c0_8, %c0_9], %9 {strides = array<i32>} : memref<1x144x1664xf32, #tpu.memory_space<vmem>>, vector<1x144x1664xf32>,
    return
  }
  func.func @transform_0(%arg0: i32, %arg1: i32) -> (i32, i32, i32) {
    %c0_i32 = arith.constant 0 : i32
    %c0_i32_0 = arith.constant 0 : i32
    return %arg1, %c0_i32, %arg0 : i32, i32, i32
  }
  func.func @transform_1(%arg0: i32, %arg1: i32) -> (i32, i32, i32) {
    %c0_i32 = arith.constant 0 : i32
    %c0_i32_0 = arith.constant 0 : i32
    return %arg1, %c0_i32, %arg0 : i32, i32, i32
  }
  func.func @transform_2(%arg0: i32, %arg1: i32) -> (i32, i32) {
    %c0_i32 = arith.constant 0 : i32
    %c0_i32_0 = arith.constant 0 : i32
    %c0_i32_1 = arith.constant 0 : i32
    return %c0_i32, %c0_i32_0 : i32, i32
  }
  func.func @transform_3(%arg0: i32, %arg1: i32) -> (i32, i32, i32) {
    %c0_i32 = arith.constant 0 : i32
    %c0_i32_0 = arith.constant 0 : i32
    return %arg1, %c0_i32, %arg0 : i32, i32, i32
  }
}

</mosaic_0001>

<bundles_post_ra>
// kernel: tpu_custom_call.1
= control target key start
LH: loop header
LB: loop body
LE: loop exit
PB: predicated region body
PF: predicated region fallthrough
CT: control target
= control target key end

     0   :  { %8 = vsyncpa [#allocation3], 0  ;;  %s3539_s0 = inlined_call_operand.hbm [shape: f32[1,24,3136], index: 0, kind: input, shape index: {}]   ;;  %s3540_s1 = inlined_call_operand.hbm [shape: f32[1,24,3136], index: 1, kind: input, shape index: {}]   ;;  %s3541_s2 = inlined_call_operand.vmem [shape: f32[144,24], index: 2, kind: input, shape index: {}]   ;;  %s3542_s3 = inlined_call_operand.hbm [shape: f32[1,144,3136], index: 3, kind: output, shape index: {}]  }
   0x1   :  { %10 = vsyncpa [#allocation3 + $0x1], 0 }
   0x2   :  { %11 = vsyncpa [#allocation6], 0 }
   0x3   :  { %13 = vsyncpa [#allocation6 + $0x1], 0 }
   0x4   :  { %14 = vsyncpa [#allocation4], 0 }
   0x5   :  { %16 = vsyncpa [#allocation4 + $0x1], 0  ;;  %s2511_s12 = smov 0   ;;  %s2513_s13 = smov 0  }
   0x6   :  { %s2515_s14 = smov 0   ;;  %s2517_s15 = smov 0  }
   0x7   :  { %s2519_s16 = smov 0   ;;  %s2521_s17 = smov 0  }
   0x8 LB: > { %s2033_s18 = sadd.s32 4294967295, %s2479_s17   ;;  %s2034_s19 = sadd.s32 4294967294, %s2479_s17   ;;  %s2479_s17 = sphi %s2521_s17, %s22_s17   ;;  %s2475_s16 = sphi %s2519_s16, %s3555_s16   ;;  %s2471_s15 = sphi %s2517_s15, %s3554_s15   ;;  %s2467_s14 = sphi %s2515_s14, %s3553_s14   ;;  %s2463_s13 = sphi %s2513_s13, %s3552_s13   ;;  %s2459_s12 = sphi %s2511_s12, %s3551_s12  }
   0x9   : > { %s34_s20 = sadd.s32 1, %s2475_s16  ;;  %s43_s21 = sadd.s32 1, %s2467_s14 }
   0xa   : > { %p36_p0 = scmp.ge.s32.totalorder %s34_s20, 2  ;;  %p50_p1 = scmp.ne.s32.totalorder %s2467_s14, %s2463_s13 }
   0xb   : > { %p51_p2 = scmp.eq.s32.totalorder %s2479_s17, 0  ;;  %p56_p3 = scmp.ne.s32.totalorder %s2463_s13, %s2459_s12 }
   0xc   : > { %s3557_s20 = smov (%p36_p0, %s34_s20), 0  ;;  %p57_p5 = scmp.eq.s32.totalorder %s2033_s18, 0 }
   0xd   : > { %p2552_p4 = por %p51_p2, %p50_p1  ;;  %s39_s23 = ssub.s32 %s2475_s16, %s3557_s20 }
   0xe   : > { %p131_p6 = scmp.eq.s32.totalorder %s2033_s18, 1  ;;  %p41_p7 = scmp.eq.s32.totalorder %s39_s23, 0 }
   0xf   : > { %p2558_p8 = por %p57_p5, %p56_p3  ;;  %p137_p10 = scmp.eq.s32.totalorder %s2034_s19, 1 }
  0x10   : > { %p2562_p9 = por %p131_p6, %p50_p1  ;;  %p3543_p12 = scmp.ge.s32.totalorder %s2479_s17, 2 }
  0x11   : > { %s2567_s26 = scalar_select %p41_p7, %s2467_s14, %s43_s21  }
  0x12   : > { %s3546_s25 = scalar_select %p2562_p9, 1, 0 }
  0x13   : > { %p2569_p11 = por %p137_p10, %p56_p3  ;;  %156 = sbr.rel (%p3543_p12) target bundleno = 98 (0x62), region = 20 }
  0x15   : > { %s3547_s27 = scalar_select %p2569_p11, 1, 0 }
  0x1a   : > { %159 = sbr.rel (!%p2552_p4) target bundleno = 62 (0x3e), region = 24  ;;  %s160_s28 = sand.u32 (%p2552_p4), 1, %s2467_s14  }
  0x1b   : > { %s165_s29 = smul.u32 (%p2552_p4), 13, %s2475_s16  ;;  %s2586_s7 = scalar_lea.sflag (%p2552_p4), [#allocation3], %s160_s28 }
  0x1c   : > { %s2270_s30 = smul.u32 (%p2552_p4), 312, %s160_s28 }
  0x1d   : > { %s166_s4 = ssub.s32 (%p2552_p4), 25, %s165_s29 }
  0x1e   : > { %p167_p13 = scmp.lt.s32.totalorder (%p2552_p4), %s166_s4, 13  ;;  %s164_s8 = scalar_lea.vmem (%p2552_p4), [#allocation2], %s2270_s30 }
  0x21   : > { %s3559_s4 = smov (!%p167_p13, %s166_s4), 13 }
  0x22   : > { %s2583_s5 = smul.u32 384, %s3559_s4 }
  0x24   : > { %s171_s6 = ssub.s32 4992, %s2583_s5 }
  0x25   : > { %172 = vsyncadd %s2586_s7, %s171_s6  ;;  %p2037_p0 = scmp.ne.s32.totalorder %s2583_s5, 0  ;;  %s2181_s9 = smul.u32 1664, %s2475_s16 }
  0x26   : > { %s2039_s10 = sshll.u32 %s3559_s4, 3  ;;  %s180_s11 = sshll.u32 %s164_s8, 4  ;;  %s2597_s11 = int_to_ptr.vmem [resolvable:$true] %s180_s11 }
  0x27   : > { %s2595_s21 = scalar_lea.hbm %s3539_s0, %s2181_s9  ;;  %s2341_s30 = scalar_lea.hbm %s3539_s0, 9600 }
  0x28   : > { %s2337_s23 = scalar_lea.hbm %s2595_s21, %s2583_s5  ;;  %p2342_p5 = scmp.lt.u32.totalorder %s2595_s21, %s3539_s0 }
  0x29   : > { %p2338_p1 = scmp.ne.s32.totalorder %s2595_s21, %s2337_s23  ;;  %p2343_p6 = scmp.lt.u32.totalorder %s2341_s30, %s2337_s23 }
  0x2a   : > { %p2345_p10 = scmp.lt.u32.totalorder %s2337_s23, %s2595_s21 }
  0x2b   : > { %p2339_p2 = pnand %p2338_p1, %p2037_p0  ;;  %p2344_p7 = por %p2343_p6, %p2342_p5 }
  0x2d   : > { %p2340_p3 = pneg %p2339_p2  ;;  %p2346_p13 = por %p2345_p10, %p2344_p7 }
  0x2f   : > { %p2347_p12 = pnand %p2346_p13, %p2340_p3 }
  0x31   : > { %2350 = shalt.err (!%p2347_p12)
}
  0x32   : > { %s2351_s9 = scalar_lea.vmem %s2597_s11, %s2583_s5  ;;  %s2481_s18 = smov [#allocation2]  }
  0x33   : > { %p2352_p1 = scmp.ne.s32.totalorder %s2597_s11, %s2351_s9  ;;  %s2355_s19 = sshll.u32 %s2481_s18, 4  ;;  %s2356_s19 = int_to_ptr.vmem [resolvable:$false] %s2355_s19 }
  0x34   : > { %s2357_s28 = scalar_lea.vmem %s2356_s19, 9984  ;;  %p2358_p9 = scmp.lt.s32.totalorder %s2597_s11, %s2356_s19 }
  0x35   : > { %p2353_p2 = pnand %p2352_p1, %p2037_p0  ;;  %p2359_p5 = scmp.lt.s32.totalorder %s2357_s28, %s2351_s9 }
  0x37   : > { %p2354_p11 = pneg %p2353_p2  ;;  %p2360_p6 = por %p2359_p5, %p2358_p9 }
  0x39   : > { %p2361_p7 = pnand %p2360_p6, %p2354_p11 }
  0x3b   : > { %2364 = shalt.err (!%p2361_p7)
}
  0x3c   : > { %s2482_s23 = smov 3200   ;;  %s2483_s29 = smov 1664  }
  0x3d   : > { %186 = dma.hbm_to_vmem [thread:$0]  (%p2037_p0), %s2595_s21, %s2583_s5, %s2597_s11, %s2586_s7, %s2482_s23, %s2483_s29, %s2039_s10  }
  0x3e PF: > { %189 = sbr.rel (!%p2552_p4) target bundleno = 98 (0x62), region = 28  ;;  %s190_s30 = sand.u32 (%p2552_p4), 1, %s2467_s14  }
  0x3f   : > { %s195_s6 = smul.u32 (%p2552_p4), 13, %s2475_s16  ;;  %s2636_s4 = scalar_lea.sflag (%p2552_p4), [#allocation6], %s190_s30 }
  0x40   : > { %s2271_s8 = smul.u32 (%p2552_p4), 312, %s190_s30 }
  0x41   : > { %s196_s9 = ssub.s32 (%p2552_p4), 25, %s195_s6 }
  0x42   : > { %p197_p9 = scmp.lt.s32.totalorder (%p2552_p4), %s196_s9, 13  ;;  %s194_s5 = scalar_lea.vmem (%p2552_p4), [#allocation5], %s2271_s8 }
  0x45   : > { %s3561_s9 = smov (!%p197_p9, %s196_s9), 13 }
  0x46   : > { %s2633_s18 = smul.u32 384, %s3561_s9 }
  0x48   : > { %s201_s19 = ssub.s32 4992, %s2633_s18 }
  0x49   : > { %202 = vsyncadd %s2636_s4, %s201_s19  ;;  %p2042_p4 = scmp.ne.s32.totalorder %s2633_s18, 0  ;;  %s2182_s22 = smul.u32 1664, %s2475_s16 }
  0x4a   : > { %s2044_s7 = sshll.u32 %s3561_s9, 3  ;;  %s210_s10 = sshll.u32 %s194_s5, 4  ;;  %s2647_s10 = int_to_ptr.vmem [resolvable:$true] %s210_s10 }
  0x4b   : > { %s2645_s28 = scalar_lea.hbm %s3540_s1, %s2182_s22  ;;  %s2369_s6 = scalar_lea.hbm %s3540_s1, 9600 }
  0x4c   : > { %s2365_s23 = scalar_lea.hbm %s2645_s28, %s2633_s18  ;;  %p2370_p3 = scmp.lt.u32.totalorder %s2645_s28, %s3540_s1 }
  0x4d   : > { %p2366_p11 = scmp.ne.s32.totalorder %s2645_s28, %s2365_s23  ;;  %p2371_p10 = scmp.lt.u32.totalorder %s2369_s6, %s2365_s23 }
  0x4e   : > { %p2373_p1 = scmp.lt.u32.totalorder %s2365_s23, %s2645_s28 }
  0x4f   : > { %p2367_p12 = pnand %p2366_p11, %p2042_p4  ;;  %p2372_p13 = por %p2371_p10, %p2370_p3 }
  0x51   : > { %p2368_p0 = pneg %p2367_p12  ;;  %p2374_p2 = por %p2373_p1, %p2372_p13 }
  0x53   : > { %p2375_p5 = pnand %p2374_p2, %p2368_p0 }
  0x55   : > { %2378 = shalt.err (!%p2375_p5)
}
  0x56   : > { %s2379_s5 = scalar_lea.vmem %s2647_s10, %s2633_s18  ;;  %s2484_s22 = smov [#allocation5]  }
  0x57   : > { %p2380_p6 = scmp.ne.s32.totalorder %s2647_s10, %s2379_s5  ;;  %s2383_s11 = sshll.u32 %s2484_s22, 4  ;;  %s2384_s11 = int_to_ptr.vmem [resolvable:$false] %s2383_s11 }
  0x58   : > { %s2385_s21 = scalar_lea.vmem %s2384_s11, 9984  ;;  %p2386_p11 = scmp.lt.s32.totalorder %s2647_s10, %s2384_s11 }
  0x59   : > { %p2381_p7 = pnand %p2380_p6, %p2042_p4  ;;  %p2387_p12 = scmp.lt.s32.totalorder %s2385_s21, %s2379_s5 }
  0x5b   : > { %p2382_p9 = pneg %p2381_p7  ;;  %p2388_p3 = por %p2387_p12, %p2386_p11 }
  0x5d   : > { %p2389_p10 = pnand %p2388_p3, %p2382_p9 }
  0x5f   : > { %2392 = shalt.err (!%p2389_p10)
}
  0x60   : > { %s2485_s23 = smov 3200   ;;  %s2486_s29 = smov 1664  }
  0x61   : > { %216 = dma.hbm_to_vmem [thread:$0]  (%p2042_p4), %s2645_s28, %s2633_s18, %s2647_s10, %s2636_s4, %s2485_s23, %s2486_s29, %s2044_s7  }
  0x62 PF: > { %p2047_p0 = scmp.ge.s32.totalorder %s2479_s17, 1  ;;  %p218_p13 = scmp.lt.s32.totalorder %s2479_s17, 3 }
  0x64   : > { %p219_p1 = pnand %p2047_p0, %p218_p13 }
  0x65   : > { %s2679_s30 = sand.u32 (!%p219_p1), 1, %s2463_s13  }
  0x66   : > { %222 = sbr.rel (%p219_p1) target bundleno = 600 (0x258), region = 32  ;;  %s225_s8 = scalar_lea.sflag (!%p219_p1), [#allocation3], %s2679_s30 }
  0x67   : > { %s2272_s6 = smul.u32 (!%p219_p1), 312, %s2679_s30 }
  0x69   : > { %s2683_s19 = scalar_lea.vmem (!%p219_p1), [#allocation2], %s2272_s6 }
  0x6d   : > { %2446 = dma.done.wait (%p2558_p8), %s225_s8, 4992  }
  0x6e   : > { %2448 = vsyncadd (%p2558_p8), %s225_s8, 4294962304  ;;  %s234_s9 = scalar_lea.sflag [#allocation6], %s2679_s30  ;;  %s2690_s18 = scalar_lea.vmem [#allocation5], %s2272_s6 }
  0x6f   : > { %2450 = dma.done.wait (%p2558_p8), %s234_s9, 4992  }
  0x70   : > { %2452 = vsyncadd (%p2558_p8), %s234_s9, 4294962304  ;;  %v2487_v0 = vmov 0.0   ;;  %v281_v1 = vld [vmem:[%s2683_s19 + $0x8] sm:$0xff]  ;;  %v294_v2 = vld [vmem:[%s2683_s19 + $0x70] sm:$0xff]  ;;  %vm415_vm0 = vcmask 195584   ;;  %s1898_s21 = scalar_lea.sflag [#allocation4], %s2679_s30 }
  0x71   : > { %534 = vmatprep.mubr.f32.mxu0 %v2487_v0  ;;  %618 = vmatprep.mubr.f32.mxu1 %v2487_v0  ;;  %v320_v3 = vld [vmem:[%s2690_s18 + $0x8] sm:$0xff]  ;;  %v333_v4 = vld [vmem:[%s2690_s18 + $0x70] sm:$0xff]  ;;  %v293_v7 = vld [vmem:[%s2683_s19 + $0x68] sm:$0xff]  ;;  %p3548_p8 = scmp.ne.s32.totalorder %s3546_s25, 0 }
  0x72   : > { %v359_v5 = vadd.f32 %v320_v3, %v281_v1  ;;  %v280_v6 = vld [vmem:[%s2683_s19] sm:$0xff]  ;;  %v372_v8 = vadd.f32 %v333_v4, %v294_v2  ;;  %v319_v9 = vld [vmem:[%s2690_s18] sm:$0xff]  ;;  %v332_v10 = vld [vmem:[%s2690_s18 + $0x68] sm:$0xff]  ;;  %s1905_s23 = smul.u32 (%p3548_p8), 13, %s2471_s15 }
  0x73   : > { %v307_v11 = vld [vmem:[%s2683_s19 + $0xd8] sm:$0xff]  ;;  %v358_v12 = vadd.f32 %v319_v9, %v280_v6  ;;  %v371_v13 = vadd.f32 %v332_v10, %v293_v7  ;;  %v346_v14 = vld [vmem:[%s2690_s18 + $0xd8] sm:$0xff]  ;;  %v306_v15 = vld [vmem:[%s2683_s19 + $0xd0] sm:$0xff] }
  0x74   : > { %v2238_v16 = vpack.c.bf16 %v372_v8, %v359_v5  ;;  %v385_v17 = vadd.f32 %v346_v14, %v307_v11  ;;  %v345_v18 = vld [vmem:[%s2690_s18 + $0xd0] sm:$0xff]  ;;  %v285_v19 = vld [vmem:[%s2683_s19 + $0x28] sm:$0xff]  ;;  %v298_v20 = vld [vmem:[%s2683_s19 + $0x90] sm:$0xff]  ;;  %s1906_s29 = ssub.s32 (%p3548_p8), 25, %s1905_s23 }
  0x75   : > { %v2240_v21 = vpack.c.bf16 %v371_v13, %v358_v12  ;;  %v324_v22 = vld [vmem:[%s2690_s18 + $0x28] sm:$0xff]  ;;  %v337_v23 = vld [vmem:[%s2690_s18 + $0x90] sm:$0xff]  ;;  %v297_v27 = vld [vmem:[%s2683_s19 + $0x88] sm:$0xff]  ;;  %v384_v30 = vadd.f32 %v345_v18, %v306_v15  ;;  %p1907_p4 = scmp.lt.s32.totalorder (%p3548_p8), %s1906_s29, 13 }
  0x76   : > { %v284_v24 = vld [vmem:[%s2683_s19 + $0x20] sm:$0xff]  ;;  %2239 = vmatprep.subr.bf16.mxu0 %v2238_v16  ;;  %2266 = vmatprep.subr.bf16.mxu1 %v2238_v16  ;;  %v363_v25 = vadd.f32 %v324_v22, %v285_v19  ;;  %v376_v26 = vadd.f32 %v337_v23, %v298_v20  ;;  %v323_v28 = vld [vmem:[%s2690_s18 + $0x20] sm:$0xff]  ;;  %v336_v29 = vld [vmem:[%s2690_s18 + $0x88] sm:$0xff] }
  0x77   : > { %2241 = vmatpush1.bf16.msra.mxu0 %v2240_v21  ;;  %2268 = vmatpush1.bf16.msra.mxu1 %v2240_v21  ;;  %v2721_v31 = vld [vmem:[%s3541_s2] sm:$0xff]  ;;  %v362_v32 = vadd.f32 %v323_v28, %v284_v24  ;;  %v375_v33 = vadd.f32 %v336_v29, %v297_v27  ;;  %v283_v34 = vld [vmem:[%s2683_s19 + $0x18] sm:$0xff]  ;;  %v335_v38 = vld [vmem:[%s2690_s18 + $0x80] sm:$0xff] }
  0x78   : > { %474 = vmatprep.subr.mxu0 %v385_v17  ;;  %v2246_v35 = vpack.c.bf16 %v376_v26, %v363_v25  ;;  %2267 = vmatprep.subr.mxu1 %v385_v17  ;;  %v296_v36 = vld [vmem:[%s2683_s19 + $0x80] sm:$0xff]  ;;  %v322_v37 = vld [vmem:[%s2690_s18 + $0x18] sm:$0xff]  ;;  %v282_v42 = vld [vmem:[%s2683_s19 + $0x10] sm:$0xff] }
  0x79   : > { %v2248_v39 = vpack.c.bf16 %v375_v33, %v362_v32  ;;  %v361_v40 = vadd.f32 %v322_v37, %v283_v34  ;;  %v374_v41 = vadd.f32 %v335_v38, %v296_v36  ;;  %v295_v43 = vld [vmem:[%s2683_s19 + $0x78] sm:$0xff]  ;;  %v321_v44 = vld [vmem:[%s2690_s18 + $0x10] sm:$0xff]  ;;  %v334_v45 = vld [vmem:[%s2690_s18 + $0x78] sm:$0xff] }
  0x7a   : > { %v360_v46 = vadd.f32 %v321_v44, %v282_v42  ;;  %v2734_v47 = vld [vmem:[%s3541_s2 + $0x70] sm:$0xff]  ;;  %v373_v49 = vadd.f32 %v334_v45, %v295_v43  ;;  %v309_v50 = vld [vmem:[%s2683_s19 + $0xe8] sm:$0xff]  ;;  %v308_v52 = vld [vmem:[%s2683_s19 + $0xe0] sm:$0xff] }
  0x7b   : > { %475 = vmatpush1.msra.mxu0 %v384_v30  ;;  %2269 = vmatpush1.msra.mxu1 %v384_v30  ;;  %v2242_v48 = vpack.c.bf16 %v374_v41, %v361_v40  ;;  %v348_v51 = vld [vmem:[%s2690_s18 + $0xe8] sm:$0xff]  ;;  %v347_v53 = vld [vmem:[%s2690_s18 + $0xe0] sm:$0xff]  ;;  %v300_v58 = vld [vmem:[%s2683_s19 + $0xa0] sm:$0xff] }
  0x7c   : > { %2048 = vmatmul.mubr.msk.f32.vlgmr.msra.gmra.mrb[0].mxu0 %vm415_vm0, %v2721_v31  ;;  %2247 = vmatprep.subr.bf16.mxu0 %v2246_v35  ;;  %v2746_v54 = vld [vmem:[%s3541_s2 + $0x8] sm:$0xff]  ;;  %v2244_v55 = vpack.c.bf16 %v373_v49, %v360_v46  ;;  %v387_v56 = vadd.f32 %v348_v51, %v309_v50  ;;  %v287_v57 = vld [vmem:[%s2683_s19 + $0x38] sm:$0xff]  ;;  %v386_v61 = vadd.f32 %v347_v53, %v308_v52  ;;  %v349_v8 = vld [vmem:[%s2690_s18 + $0xf0] sm:$0xff] }
  0x7d   : > { %2249 = vmatpush1.bf16.msra.mxu0 %v2248_v39  ;;  %540 = vmatprep.mubr.f32.mxu0 %v2487_v0  ;;  %v326_v59 = vld [vmem:[%s2690_s18 + $0x38] sm:$0xff]  ;;  %v2757_v60 = vld [vmem:[%s3541_s2 + $0x78] sm:$0xff]  ;;  %v339_v62 = vld [vmem:[%s2690_s18 + $0xa0] sm:$0xff] }
  0x7e   : > { %2062 = vmatmul.mubr.msk.f32.vlgmr.msra.gmra.mrb[0].mxu1 %vm415_vm0, %v2734_v47  ;;  %2243 = vmatprep.subr.bf16.mxu1 %v2242_v48  ;;  %v365_v63 = vadd.f32 %v326_v59, %v287_v57  ;;  %v378_v1 = vadd.f32 %v339_v62, %v300_v58  ;;  %v2766_v2 = vld [vmem:[%s3541_s2 + $0x10] sm:$0xff]  ;;  %v350_v4 = vld [vmem:[%s2690_s18 + $0xf8] sm:$0xff]  ;;  %v325_v13 = vld [vmem:[%s2690_s18 + $0x30] sm:$0xff] }
  0x7f   : > { %2245 = vmatpush1.bf16.msra.mxu1 %v2244_v55  ;;  %624 = vmatprep.mubr.f32.mxu1 %v2487_v0  ;;  %v311_v3 = vld [vmem:[%s2683_s19 + $0xf8] sm:$0xff]  ;;  %v310_v7 = vld [vmem:[%s2683_s19 + $0xf0] sm:$0xff]  ;;  %v2778_v9 = vld [vmem:[%s3541_s2 + $0x80] sm:$0xff] }
  0x80   : > { %2049 = vmatmul.mubr.msk.f32.gmra.mrb[2].mxu0 %vm415_vm0, %v2746_v54  ;;  %647 = vmatprep.subr.mxu1 %v387_v56  ;;  %v2250_v5 = vpack.c.bf16 %v378_v1, %v365_v63  ;;  %v389_v6 = vadd.f32 %v350_v4, %v311_v3  ;;  %v286_v10 = vld [vmem:[%s2683_s19 + $0x30] sm:$0xff]  ;;  %v388_v11 = vadd.f32 %v349_v8, %v310_v7  ;;  %v299_v12 = vld [vmem:[%s2683_s19 + $0x98] sm:$0xff]  ;;  %v338_v14 = vld [vmem:[%s2690_s18 + $0x98] sm:$0xff] }
  0x81   : > { %546 = vmatprep.mubr.f32.mxu0 %v2487_v0  ;;  %v2790_v15 = vld [vmem:[%s3541_s2 + $0x18] sm:$0xff]  ;;  %v289_v16 = vld [vmem:[%s2683_s19 + $0x48] sm:$0xff]  ;;  %v302_v17 = vld [vmem:[%s2683_s19 + $0xb0] sm:$0xff]  ;;  %v364_v21 = vadd.f32 %v325_v13, %v286_v10  ;;  %v377_v22 = vadd.f32 %v338_v14, %v299_v12 }
  0x82   : > { %2063 = vmatmul.mubr.msk.f32.gmra.mrb[2].mxu1 %vm415_vm0, %v2757_v60  ;;  %820 = vmatprep.subr.mxu0 %v389_v6  ;;  %v328_v18 = vld [vmem:[%s2690_s18 + $0x48] sm:$0xff]  ;;  %v341_v19 = vld [vmem:[%s2690_s18 + $0xb0] sm:$0xff]  ;;  %v2802_v20 = vld [vmem:[%s3541_s2 + $0x88] sm:$0xff] }
  0x83   : > { %630 = vmatprep.mubr.f32.mxu1 %v2487_v0  ;;  %648 = vmatpush1.msra.mxu1 %v386_v61  ;;  %v367_v23 = vadd.f32 %v328_v18, %v289_v16  ;;  %v380_v24 = vadd.f32 %v341_v19, %v302_v17  ;;  %v2809_v25 = vld [vmem:[%s3541_s2 + $0x20] sm:$0xff]  ;;  %v352_v27 = vld [vmem:[%s2690_s18 + $0x108] sm:$0xff]  ;;  %v343_v33 = vld [vmem:[%s2690_s18 + $0xc0] sm:$0xff]  ;;  %v2252_v34 = vpack.c.bf16 %v377_v22, %v364_v21 }
  0x84   : > { %2050 = vmatmul.mubr.msk.f32.gmra.mrb[4].mxu0 %vm415_vm0, %v2766_v2  ;;  %2251 = vmatprep.subr.bf16.mxu1 %v2250_v5  ;;  %v313_v26 = vld [vmem:[%s2683_s19 + $0x108] sm:$0xff]  ;;  %v291_v29 = vld [vmem:[%s2683_s19 + $0x58] sm:$0xff]  ;;  %v304_v30 = vld [vmem:[%s2683_s19 + $0xc0] sm:$0xff] }
  0x85   : > { %552 = vmatprep.mubr.f32.mxu0 %v2487_v0  ;;  %821 = vmatpush1.msra.mxu0 %v388_v11  ;;  %v2254_v28 = vpack.c.bf16 %v380_v24, %v367_v23  ;;  %v330_v32 = vld [vmem:[%s2690_s18 + $0x58] sm:$0xff]  ;;  %v391_v35 = vadd.f32 %v352_v27, %v313_v26  ;;  %v312_v36 = vld [vmem:[%s2683_s19 + $0x100] sm:$0xff]  ;;  %v351_v37 = vld [vmem:[%s2690_s18 + $0x100] sm:$0xff]  ;;  %v382_v39 = vadd.f32 %v343_v33, %v304_v30 }
  0x86   : > { %2064 = vmatmul.mubr.msk.f32.gmra.mrb[4].mxu1 %vm415_vm0, %v2778_v9  ;;  %v369_v38 = vadd.f32 %v330_v32, %v291_v29  ;;  %v2829_v40 = vld [vmem:[%s3541_s2 + $0x28] sm:$0xff]  ;;  %v390_v41 = vadd.f32 %v351_v37, %v312_v36  ;;  %v2840_v43 = vld [vmem:[%s3541_s2 + $0x30] sm:$0xff]  ;;  %v2851_v44 = vld [vmem:[%s3541_s2 + $0x38] sm:$0xff] }
  0x87   : > { %636 = vmatprep.mubr.f32.mxu1 %v2487_v0  ;;  %2255 = vmatprep.subr.bf16.mxu0 %v2254_v28  ;;  %v2862_v45 = vld [vmem:[%s3541_s2 + $0x40] sm:$0xff]  ;;  %v2873_v46 = vld [vmem:[%s3541_s2 + $0x48] sm:$0xff]  ;;  %v2884_v48 = vld [vmem:[%s3541_s2 + $0x50] sm:$0xff] }
  0x88   : > { %2051 = vmatmul.mubr.msk.f32.gmra.mrb[6].mxu0 %vm415_vm0, %v2790_v15  ;;  %v2258_v42 = vpack.c.bf16 %v382_v39, %v369_v38  ;;  %v2895_v49 = vld [vmem:[%s3541_s2 + $0x58] sm:$0xff]  ;;  %v2906_v50 = vld [vmem:[%s3541_s2 + $0x60] sm:$0xff]  ;;  %v327_v53 = vld [vmem:[%s2690_s18 + $0x40] sm:$0xff] }
  0x89   : > { %558 = vmatprep.mubr.f32.mxu0 %v2487_v0  ;;  %v288_v51 = vld [vmem:[%s2683_s19 + $0x40] sm:$0xff]  ;;  %v301_v52 = vld [vmem:[%s2683_s19 + $0xa8] sm:$0xff]  ;;  %v340_v55 = vld [vmem:[%s2690_s18 + $0xa8] sm:$0xff] }
  0x8a   : > { %2065 = vmatmul.mubr.msk.f32.gmra.mrb[6].mxu1 %vm415_vm0, %v2802_v20  ;;  %v2921_v56 = vld [vmem:[%s3541_s2 + $0x68] sm:$0xff]  ;;  %v366_v57 = vadd.f32 %v327_v53, %v288_v51  ;;  %v379_v58 = vadd.f32 %v340_v55, %v301_v52  ;;  %v315_v59 = vld [vmem:[%s2683_s19 + $0x118] sm:$0xff]  ;;  %v292_v62 = vld [vmem:[%s2683_s19 + $0x60] sm:$0xff] }
  0x8b   : > { %707 = vmatprep.mubr.f32.mxu1 %v2487_v0  ;;  %v354_v61 = vld [vmem:[%s2690_s18 + $0x118] sm:$0xff]  ;;  %v331_v1 = vld [vmem:[%s2690_s18 + $0x60] sm:$0xff]  ;;  %v344_v3 = vld [vmem:[%s2690_s18 + $0xc8] sm:$0xff] }
  0x8c   : > { %2052 = vmatmul.mubr.msk.f32.gmra.mrb[8].mxu0 %vm415_vm0, %v2809_v25  ;;  %v305_v63 = vld [vmem:[%s2683_s19 + $0xc8] sm:$0xff]  ;;  %v2256_v4 = vpack.c.bf16 %v379_v58, %v366_v57  ;;  %v393_v5 = vadd.f32 %v354_v61, %v315_v59  ;;  %v314_v6 = vld [vmem:[%s2683_s19 + $0x110] sm:$0xff]  ;;  %v353_v7 = vld [vmem:[%s2690_s18 + $0x110] sm:$0xff]  ;;  %v370_v8 = vadd.f32 %v331_v1, %v292_v62 }
  0x8d   : > { %564 = vmatprep.mubr.f32.mxu0 %v2487_v0  ;;  %v383_v10 = vadd.f32 %v344_v3, %v305_v63  ;;  %v392_v11 = vadd.f32 %v353_v7, %v314_v6  ;;  %v290_v13 = vld [vmem:[%s2683_s19 + $0x50] sm:$0xff]  ;;  %v303_v14 = vld [vmem:[%s2683_s19 + $0xb8] sm:$0xff]  ;;  %v329_v16 = vld [vmem:[%s2690_s18 + $0x50] sm:$0xff] }
  0x8e   : > { %2066 = vmatmul.mubr.msk.f32.vlgmr.msra.gmra.mrb[8].mxu1 %vm415_vm0, %v2721_v31  ;;  %v342_v17 = vld [vmem:[%s2690_s18 + $0xb8] sm:$0xff]  ;;  %v368_v18 = vadd.f32 %v329_v16, %v290_v13  ;;  %v356_v22 = vld [vmem:[%s2690_s18 + $0x128] sm:$0xff]  ;;  %v316_v26 = vld [vmem:[%s2683_s19 + $0x120] sm:$0xff] }
  0x8f   : > { %2253 = vmatpush1.bf16.msra.mxu1 %v2252_v34  ;;  %713 = vmatprep.mubr.f32.mxu1 %v2487_v0  ;;  %v2945_v12 = vpack.c.bf16 %v383_v10, %v370_v8  ;;  %v381_v19 = vadd.f32 %v342_v17, %v303_v14  ;;  %v317_v21 = vld [vmem:[%s2683_s19 + $0x128] sm:$0xff]  ;;  %v355_v27 = vld [vmem:[%s2690_s18 + $0x120] sm:$0xff]  ;;  %v357_v30 = vld [vmem:[%s2690_s18 + $0x130] sm:$0xff] }
  0x90   : > { %2053 = vmatmul.mubr.msk.f32.gmra.mrb[10].mxu0 %vm415_vm0, %v2829_v40  ;;  %993 = vmatprep.subr.mxu1 %v391_v35  ;;  %v395_v24 = vadd.f32 %v356_v22, %v317_v21  ;;  %v394_v28 = vadd.f32 %v355_v27, %v316_v26  ;;  %v318_v29 = vld [vmem:[%s2683_s19 + $0x130] sm:$0xff]  ;;  %s2273_s19 = smul.u32 1872, %s2679_s30 }
  0x91   : > { %570 = vmatprep.mubr.f32.mxu0 %v2487_v0  ;;  %v2260_v23 = vpack.c.bf16 %v381_v19, %v368_v18  ;;  %v396_v32 = vadd.f32 %v357_v30, %v318_v29 }
  0x92   : > { %2067 = vmatmul.mubr.msk.f32.gmra.mrb[10].mxu1 %vm415_vm0, %v2746_v54  ;;  %s3193_s18 = scalar_lea.vmem [#allocation7], %s2273_s19 }
  0x93   : > { %719 = vmatprep.mubr.f32.mxu1 %v2487_v0  ;;  %994 = vmatpush1.msra.mxu1 %v390_v41 }
  0x94   : > { %2054 = vmatmul.mubr.msk.f32.gmra.mrb[12].mxu0 %vm415_vm0, %v2840_v43  ;;  %2259 = vmatprep.subr.bf16.mxu1 %v2258_v42 }
  0x95   : > { %576 = vmatprep.mubr.f32.mxu0 %v2487_v0 }
  0x96   : > { %2068 = vmatmul.mubr.msk.f32.gmra.mrb[12].mxu1 %vm415_vm0, %v2766_v2 }
  0x97   : > { %725 = vmatprep.mubr.f32.mxu1 %v2487_v0 }
  0x98   : > { %2055 = vmatmul.mubr.msk.f32.gmra.mrb[14].mxu0 %vm415_vm0, %v2851_v44 }
  0x99   : > { %582 = vmatprep.mubr.f32.mxu0 %v2487_v0 }
  0x9a   : > { %2069 = vmatmul.mubr.msk.f32.gmra.mrb[14].mxu1 %vm415_vm0, %v2790_v15 }
  0x9b   : > { %731 = vmatprep.mubr.f32.mxu1 %v2487_v0 }
  0x9c   : > { %2056 = vmatmul.mubr.msk.f32.gmra.mrb[16].mxu0 %vm415_vm0, %v2862_v45 }
  0x9d   : > { %588 = vmatprep.mubr.f32.mxu0 %v2487_v0 }
  0x9e   : > { %2070 = vmatmul.mubr.msk.f32.gmra.mrb[16].mxu1 %vm415_vm0, %v2809_v25 }
  0x9f   : > { %737 = vmatprep.mubr.f32.mxu1 %v2487_v0 }
  0xa0   : > { %2057 = vmatmul.mubr.msk.f32.gmra.mrb[18].mxu0 %vm415_vm0, %v2873_v46 }
  0xa1   : > { %594 = vmatprep.mubr.f32.mxu0 %v2487_v0 }
  0xa2   : > { %2071 = vmatmul.mubr.msk.f32.gmra.mrb[18].mxu1 %vm415_vm0, %v2829_v40 }
  0xa3   : > { %743 = vmatprep.mubr.f32.mxu1 %v2487_v0 }
  0xa4   : > { %2058 = vmatmul.mubr.msk.f32.gmra.mrb[20].mxu0 %vm415_vm0, %v2884_v48 }
  0xa5   : > { %600 = vmatprep.mubr.f32.mxu0 %v2487_v0 }
  0xa6   : > { %2072 = vmatmul.mubr.msk.f32.gmra.mrb[20].mxu1 %vm415_vm0, %v2840_v43 }
  0xa7   : > { %749 = vmatprep.mubr.f32.mxu1 %v2487_v0 }
  0xa8   : > { %2059 = vmatmul.mubr.msk.f32.gmra.mrb[22].mxu0 %vm415_vm0, %v2895_v49 }
  0xa9   : > { %606 = vmatprep.mubr.f32.mxu0 %v2487_v0 }
  0xaa   : > { %2073 = vmatmul.mubr.msk.f32.gmra.mrb[22].mxu1 %vm415_vm0, %v2851_v44 }
  0xab   : > { %755 = vmatprep.mubr.f32.mxu1 %v2487_v0 }
  0xac   : > { %2060 = vmatmul.mubr.msk.f32.gmra.mrb[24].mxu0 %vm415_vm0, %v2906_v50 }
  0xad   : > { %612 = vmatprep.mubr.f32.mxu0 %v2487_v0 }
  0xae   : > { %2074 = vmatmul.mubr.msk.f32.gmra.mrb[24].mxu1 %vm415_vm0, %v2862_v45 }
  0xaf   : > { %761 = vmatprep.mubr.f32.mxu1 %v2487_v0 }
  0xb0   : > { %2061 = vmatmul.mubr.msk.f32.gmra.mrb[26].mxu0 %vm415_vm0, %v2921_v56 }
  0xb1   : > { %880 = vmatprep.mubr.f32.mxu0 %v2487_v0 }
  0xb2   : > { %2075 = vmatmul.mubr.msk.f32.gmra.mrb[26].mxu1 %vm415_vm0, %v2873_v46 }
  0xb3   : > { %767 = vmatprep.mubr.f32.mxu1 %v2487_v0 }
  0xb4   : > { %2084 = vmatmul.mubr.msk.f32.vlgmr.msra.gmra.mrb[28].mxu0 %vm415_vm0, %v2721_v31 }
  0xb5   : > { %2257 = vmatpush1.bf16.msra.mxu0 %v2256_v4  ;;  %886 = vmatprep.mubr.f32.mxu0 %v2487_v0 }
  0xb6   : > { %2076 = vmatmul.mubr.msk.f32.gmra.mrb[28].mxu1 %vm415_vm0, %v2884_v48  ;;  %1166 = vmatprep.subr.mxu0 %v393_v5 }
  0xb7   : > { %773 = vmatprep.mubr.f32.mxu1 %v2487_v0 }
  0xb8   : > { %2085 = vmatmul.mubr.msk.f32.gmra.mrb[30].mxu0 %vm415_vm0, %v2746_v54 }
  0xb9   : > { %892 = vmatprep.mubr.f32.mxu0 %v2487_v0  ;;  %1167 = vmatpush1.msra.mxu0 %v392_v11 }
  0xba   : > { %2077 = vmatmul.mubr.msk.f32.gmra.mrb[30].mxu1 %vm415_vm0, %v2895_v49  ;;  %2263 = vmatprep.subr.bf16.mxu0 %v2945_v12 }
  0xbb   : > { %779 = vmatprep.mubr.f32.mxu1 %v2487_v0 }
  0xbc   : > { %2086 = vmatmul.mubr.msk.f32.gmra.mrb[32].mxu0 %vm415_vm0, %v2766_v2 }
  0xbd   : > { %898 = vmatprep.mubr.f32.mxu0 %v2487_v0 }
  0xbe   : > { %2078 = vmatmul.mubr.msk.f32.gmra.mrb[32].mxu1 %vm415_vm0, %v2906_v50 }
  0xbf   : > { %785 = vmatprep.mubr.f32.mxu1 %v2487_v0 }
  0xc0   : > { %2087 = vmatmul.mubr.msk.f32.gmra.mrb[34].mxu0 %vm415_vm0, %v2790_v15 }
  0xc1   : > { %904 = vmatprep.mubr.f32.mxu0 %v2487_v0 }
  0xc2   : > { %2079 = vmatmul.mubr.msk.f32.gmra.mrb[34].mxu1 %vm415_vm0, %v2921_v56 }
  0xc3   : > { %791 = vmatprep.mubr.f32.mxu1 %v2487_v0 }
  0xc4   : > { %2088 = vmatmul.mubr.msk.f32.gmra.mrb[36].mxu0 %vm415_vm0, %v2809_v25 }
  0xc5   : > { %910 = vmatprep.mubr.f32.mxu0 %v2487_v0 }
  0xc6   : > { %2080 = vmatmul.mubr.msk.f32.gmra.mrb[36].mxu1 %vm415_vm0, %v2734_v47 }
  0xc7   : > { %797 = vmatprep.mubr.f32.mxu1 %v2487_v0 }
  0xc8   : > { %2089 = vmatmul.mubr.msk.f32.gmra.mrb[38].mxu0 %vm415_vm0, %v2829_v40 }
  0xc9   : > { %916 = vmatprep.mubr.f32.mxu0 %v2487_v0 }
  0xca   : > { %2081 = vmatmul.mubr.msk.f32.gmra.mrb[38].mxu1 %vm415_vm0, %v2757_v60 }
  0xcb   : > { %803 = vmatprep.mubr.f32.mxu1 %v2487_v0 }
  0xcc   : > { %2090 = vmatmul.mubr.msk.f32.gmra.mrb[40].mxu0 %vm415_vm0, %v2840_v43 }
  0xcd   : > { %922 = vmatprep.mubr.f32.mxu0 %v2487_v0 }
  0xce   : > { %2082 = vmatmul.mubr.msk.f32.gmra.mrb[40].mxu1 %vm415_vm0, %v2778_v9 }
  0xcf   : > { %809 = vmatprep.mubr.f32.mxu1 %v2487_v0 }
  0xd0   : > { %2091 = vmatmul.mubr.msk.f32.gmra.mrb[42].mxu0 %vm415_vm0, %v2851_v44 }
  0xd1   : > { %928 = vmatprep.mubr.f32.mxu0 %v2487_v0 }
  0xd2   : > { %2083 = vmatmul.mubr.msk.f32.gmra.mrb[42].mxu1 %vm415_vm0, %v2802_v20 }
  0xd3   : > { %1053 = vmatprep.mubr.f32.mxu1 %v2487_v0 }
  0xd4   : > { %2092 = vmatmul.mubr.msk.f32.gmra.mrb[44].mxu0 %vm415_vm0, %v2862_v45 }
  0xd5   : > { %934 = vmatprep.mubr.f32.mxu0 %v2487_v0 }
  0xd6   : > { %2102 = vmatmul.mubr.msk.f32.vlgmr.msra.gmra.mrb[44].mxu1 %vm415_vm0, %v2721_v31 }
  0xd7   : > { %2261 = vmatpush1.bf16.msra.mxu1 %v2260_v23  ;;  %1059 = vmatprep.mubr.f32.mxu1 %v2487_v0 }
  0xd8   : > { %2093 = vmatmul.mubr.msk.f32.gmra.mrb[46].mxu0 %vm415_vm0, %v2873_v46  ;;  %1339 = vmatprep.subr.mxu1 %v395_v24 }
  0xd9   : > { %940 = vmatprep.mubr.f32.mxu0 %v2487_v0 }
  0xda   : > { %2103 = vmatmul.mubr.msk.f32.gmra.mrb[46].mxu1 %vm415_vm0, %v2746_v54 }
  0xdb   : > { %1065 = vmatprep.mubr.f32.mxu1 %v2487_v0  ;;  %1340 = vmatpush1.msra.mxu1 %v394_v28 }
  0xdc   : > { %2094 = vmatmul.mubr.msk.f32.gmra.mrb[48].mxu0 %vm415_vm0, %v2884_v48 }
  0xdd   : > { %946 = vmatprep.mubr.f32.mxu0 %v2487_v0 }
  0xde   : > { %2104 = vmatmul.mubr.msk.f32.gmra.mrb[48].mxu1 %vm415_vm0, %v2766_v2 }
  0xdf   : > { %1071 = vmatprep.mubr.f32.mxu1 %v2487_v0 }
  0xe0   : > { %2095 = vmatmul.mubr.msk.f32.gmra.mrb[50].mxu0 %vm415_vm0, %v2895_v49 }
  0xe1   : > { %952 = vmatprep.mubr.f32.mxu0 %v2487_v0 }
  0xe2   : > { %2105 = vmatmul.mubr.msk.f32.gmra.mrb[50].mxu1 %vm415_vm0, %v2790_v15 }
  0xe3   : > { %1077 = vmatprep.mubr.f32.mxu1 %v2487_v0 }
  0xe4   : > { %2096 = vmatmul.mubr.msk.f32.gmra.mrb[52].mxu0 %vm415_vm0, %v2906_v50 }
  0xe5   : > { %958 = vmatprep.mubr.f32.mxu0 %v2487_v0 }
  0xe6   : > { %2106 = vmatmul.mubr.msk.f32.gmra.mrb[52].mxu1 %vm415_vm0, %v2809_v25 }
  0xe7   : > { %1083 = vmatprep.mubr.f32.mxu1 %v2487_v0 }
  0xe8   : > { %2097 = vmatmul.mubr.msk.f32.gmra.mrb[54].mxu0 %vm415_vm0, %v2921_v56 }
  0xe9   : > { %964 = vmatprep.mubr.f32.mxu0 %v2487_v0 }
  0xea   : > { %2107 = vmatmul.mubr.msk.f32.gmra.mrb[54].mxu1 %vm415_vm0, %v2829_v40 }
  0xeb   : > { %1089 = vmatprep.mubr.f32.mxu1 %v2487_v0 }
  0xec   : > { %2098 = vmatmul.mubr.msk.f32.gmra.mrb[56].mxu0 %vm415_vm0, %v2734_v47 }
  0xed   : > { %970 = vmatprep.mubr.f32.mxu0 %v2487_v0 }
  0xee   : > { %2108 = vmatmul.mubr.msk.f32.gmra.mrb[56].mxu1 %vm415_vm0, %v2840_v43 }
  0xef   : > { %1095 = vmatprep.mubr.f32.mxu1 %v2487_v0 }
  0xf0   : > { %2099 = vmatmul.mubr.msk.f32.gmra.mrb[58].mxu0 %vm415_vm0, %v2757_v60 }
  0xf1   : > { %976 = vmatprep.mubr.f32.mxu0 %v2487_v0 }
  0xf2   : > { %2109 = vmatmul.mubr.msk.f32.gmra.mrb[58].mxu1 %vm415_vm0, %v2851_v44 }
  0xf3   : > { %1101 = vmatprep.mubr.f32.mxu1 %v2487_v0 }
  0xf4   : > { %2100 = vmatmul.mubr.msk.f32.gmra.mrb[60].mxu0 %vm415_vm0, %v2778_v9 }
  0xf5   : > { %982 = vmatprep.mubr.f32.mxu0 %v2487_v0 }
  0xf6   : > { %2110 = vmatmul.mubr.msk.f32.gmra.mrb[60].mxu1 %vm415_vm0, %v2862_v45 }
  0xf7   : > { %1107 = vmatprep.mubr.f32.mxu1 %v2487_v0 }
  0xf8   : > { %2101 = vmatmul.mubr.msk.f32.gmra.mrb[62].mxu0 %vm415_vm0, %v2802_v20 }
  0xf9   : > { %1226 = vmatprep.mubr.f32.mxu0 %v2487_v0 }
  0xfa   : > { %2111 = vmatmul.mubr.msk.f32.gmra.mrb[62].mxu1 %vm415_vm0, %v2873_v46 }
  0xfb   : > { %1113 = vmatprep.mubr.f32.mxu1 %v2487_v0 }
  0xfc   : > { %2120 = vmatmul.mubr.msk.f32.vlgmr.msra.gmra.mrb[64].mxu0 %vm415_vm0, %v2721_v31 }
  0xfd   : > { %2265 = vmatpush3.bf16.msra.mxu0 %v2945_v12  ;;  %1232 = vmatprep.mubr.f32.mxu0 %v2487_v0 }
  0xfe   : > { %2112 = vmatmul.mubr.msk.f32.gmra.mrb[64].mxu1 %vm415_vm0, %v2884_v48  ;;  %2209 = vmatprep.subr.mxu0 %v396_v32 }
  0xff   : > { %1119 = vmatprep.mubr.f32.mxu1 %v2487_v0 }
 0x100   : > { %2121 = vmatmul.mubr.msk.f32.gmra.mrb[66].mxu0 %vm415_vm0, %v2746_v54 }
 0x101   : > { %1238 = vmatprep.mubr.f32.mxu0 %v2487_v0  ;;  %2210 = vmatpush3.msra.mxu0 %v396_v32 }
 0x102   : > { %2113 = vmatmul.mubr.msk.f32.gmra.mrb[66].mxu1 %vm415_vm0, %v2895_v49 }
 0x103   : > { %1125 = vmatprep.mubr.f32.mxu1 %v2487_v0 }
 0x104   : > { %2122 = vmatmul.mubr.msk.f32.gmra.mrb[68].mxu0 %vm415_vm0, %v2766_v2 }
 0x105   : > { %1244 = vmatprep.mubr.f32.mxu0 %v2487_v0 }
 0x106   : > { %2114 = vmatmul.mubr.msk.f32.gmra.mrb[68].mxu1 %vm415_vm0, %v2906_v50 }
 0x107   : > { %1131 = vmatprep.mubr.f32.mxu1 %v2487_v0 }
 0x108   : > { %2123 = vmatmul.mubr.msk.f32.gmra.mrb[70].mxu0 %vm415_vm0, %v2790_v15 }
 0x109   : > { %1250 = vmatprep.mubr.f32.mxu0 %v2487_v0 }
 0x10a   : > { %2115 = vmatmul.mubr.msk.f32.gmra.mrb[70].mxu1 %vm415_vm0, %v2921_v56 }
 0x10b   : > { %1137 = vmatprep.mubr.f32.mxu1 %v2487_v0 }
 0x10c   : > { %2124 = vmatmul.mubr.msk.f32.gmra.mrb[72].mxu0 %vm415_vm0, %v2809_v25 }
 0x10d   : > { %1256 = vmatprep.mubr.f32.mxu0 %v2487_v0 }
 0x10e   : > { %2116 = vmatmul.mubr.msk.f32.gmra.mrb[72].mxu1 %vm415_vm0, %v2734_v47 }
 0x10f   : > { %1143 = vmatprep.mubr.f32.mxu1 %v2487_v0 }
 0x110   : > { %2125 = vmatmul.mubr.msk.f32.gmra.mrb[74].mxu0 %vm415_vm0, %v2829_v40 }
 0x111   : > { %1262 = vmatprep.mubr.f32.mxu0 %v2487_v0 }
 0x112   : > { %2117 = vmatmul.mubr.msk.f32.gmra.mrb[74].mxu1 %vm415_vm0, %v2757_v60 }
 0x113   : > { %1149 = vmatprep.mubr.f32.mxu1 %v2487_v0 }
 0x114   : > { %2126 = vmatmul.mubr.msk.f32.gmra.mrb[76].mxu0 %vm415_vm0, %v2840_v43 }
 0x115   : > { %1268 = vmatprep.mubr.f32.mxu0 %v2487_v0 }
 0x116   : > { %2118 = vmatmul.mubr.msk.f32.gmra.mrb[76].mxu1 %vm415_vm0, %v2778_v9 }
 0x117   : > { %1155 = vmatprep.mubr.f32.mxu1 %v2487_v0 }
 0x118   : > { %2127 = vmatmul.mubr.msk.f32.gmra.mrb[78].mxu0 %vm415_vm0, %v2851_v44 }
 0x119   : > { %1274 = vmatprep.mubr.f32.mxu0 %v2487_v0 }
 0x11a   : > { %2119 = vmatmul.mubr.msk.f32.gmra.mrb[78].mxu1 %vm415_vm0, %v2802_v20 }
 0x11b   : > { %1399 = vmatprep.mubr.f32.mxu1 %v2487_v0 }
 0x11c   : > { %2128 = vmatmul.mubr.msk.f32.gmra.mrb[80].mxu0 %vm415_vm0, %v2862_v45 }
 0x11d   : > { %1280 = vmatprep.mubr.f32.mxu0 %v2487_v0 }
 0x11e   : > { %2138 = vmatmul.mubr.msk.f32.vlgmr.msra.gmra.mrb[80].mxu1 %vm415_vm0, %v2721_v31 }
 0x11f   : > { %1405 = vmatprep.mubr.f32.mxu1 %v2487_v0 }
 0x120   : > { %2129 = vmatmul.mubr.msk.f32.gmra.mrb[82].mxu0 %vm415_vm0, %v2873_v46 }
 0x121   : > { %1286 = vmatprep.mubr.f32.mxu0 %v2487_v0 }
 0x122   : > { %2139 = vmatmul.mubr.msk.f32.gmra.mrb[82].mxu1 %vm415_vm0, %v2746_v54 }
 0x123   : > { %1411 = vmatprep.mubr.f32.mxu1 %v2487_v0 }
 0x124   : > { %2130 = vmatmul.mubr.msk.f32.gmra.mrb[84].mxu0 %vm415_vm0, %v2884_v48 }
 0x125   : > { %1292 = vmatprep.mubr.f32.mxu0 %v2487_v0 }
 0x126   : > { %2140 = vmatmul.mubr.msk.f32.gmra.mrb[84].mxu1 %vm415_vm0, %v2766_v2 }
 0x127   : > { %1417 = vmatprep.mubr.f32.mxu1 %v2487_v0 }
 0x128   : > { %2131 = vmatmul.mubr.msk.f32.gmra.mrb[86].mxu0 %vm415_vm0, %v2895_v49 }
 0x129   : > { %1298 = vmatprep.mubr.f32.mxu0 %v2487_v0 }
 0x12a   : > { %2141 = vmatmul.mubr.msk.f32.gmra.mrb[86].mxu1 %vm415_vm0, %v2790_v15 }
 0x12b   : > { %1423 = vmatprep.mubr.f32.mxu1 %v2487_v0 }
 0x12c   : > { %2132 = vmatmul.mubr.msk.f32.gmra.mrb[88].mxu0 %vm415_vm0, %v2906_v50 }
 0x12d   : > { %1304 = vmatprep.mubr.f32.mxu0 %v2487_v0 }
 0x12e   : > { %2142 = vmatmul.mubr.msk.f32.gmra.mrb[88].mxu1 %vm415_vm0, %v2809_v25 }
 0x12f   : > { %1429 = vmatprep.mubr.f32.mxu1 %v2487_v0 }
 0x130   : > { %2133 = vmatmul.mubr.msk.f32.gmra.mrb[90].mxu0 %vm415_vm0, %v2921_v56 }
 0x131   : > { %1310 = vmatprep.mubr.f32.mxu0 %v2487_v0 }
 0x132   : > { %2143 = vmatmul.mubr.msk.f32.gmra.mrb[90].mxu1 %vm415_vm0, %v2829_v40 }
 0x133   : > { %1435 = vmatprep.mubr.f32.mxu1 %v2487_v0 }
 0x134   : > { %2134 = vmatmul.mubr.msk.f32.gmra.mrb[92].mxu0 %vm415_vm0, %v2734_v47 }
 0x135   : > { %1316 = vmatprep.mubr.f32.mxu0 %v2487_v0 }
 0x136   : > { %2144 = vmatmul.mubr.msk.f32.gmra.mrb[92].mxu1 %vm415_vm0, %v2840_v43 }
 0x137   : > { %1441 = vmatprep.mubr.f32.mxu1 %v2487_v0 }
 0x138   : > { %2135 = vmatmul.mubr.msk.f32.gmra.mrb[94].mxu0 %vm415_vm0, %v2757_v60 }
 0x139   : > { %1322 = vmatprep.mubr.f32.mxu0 %v2487_v0 }
 0x13a   : > { %2145 = vmatmul.mubr.msk.f32.gmra.mrb[94].mxu1 %vm415_vm0, %v2851_v44 }
 0x13b   : > { %1447 = vmatprep.mubr.f32.mxu1 %v2487_v0 }
 0x13c   : > { %2136 = vmatmul.mubr.msk.f32.gmra.mrb[96].mxu0 %vm415_vm0, %v2778_v9 }
 0x13d   : > { %1328 = vmatprep.mubr.f32.mxu0 %v2487_v0 }
 0x13e   : > { %2146 = vmatmul.mubr.msk.f32.gmra.mrb[96].mxu1 %vm415_vm0, %v2862_v45 }
 0x13f   : > { %1453 = vmatprep.mubr.f32.mxu1 %v2487_v0 }
 0x140   : > { %2137 = vmatmul.mubr.msk.f32.gmra.mrb[98].mxu0 %vm415_vm0, %v2802_v20 }
 0x141   : > { %2211 = vmatprep.mubr.msk.f32.mxu0 %vm415_vm0, %v2721_v31 }
 0x142   : > { %2147 = vmatmul.mubr.msk.f32.gmra.mrb[98].mxu1 %vm415_vm0, %v2873_v46 }
 0x143   : > { %1459 = vmatprep.mubr.f32.mxu1 %v2487_v0 }
 0x144   : > { %2212 = vmatmul.mubr.msk.f32.vlgmr.msra.gmra.mrb[100].mxu0 %vm415_vm0, %v2746_v54 }
 0x145   : > { %2214 = vmatprep.mubr.msk.f32.mxu0 %vm415_vm0, %v2766_v2 }
 0x146   : > { %2148 = vmatmul.mubr.msk.f32.gmra.mrb[100].mxu1 %vm415_vm0, %v2884_v48 }
 0x147   : > { %1465 = vmatprep.mubr.f32.mxu1 %v2487_v0 }
 0x148   : > { %2215 = vmatmul.mubr.msk.f32.gmra.mrb[102].mxu0 %vm415_vm0, %v2790_v15 }
 0x149   : > { %2217 = vmatprep.mubr.msk.f32.mxu0 %vm415_vm0, %v2809_v25 }
 0x14a   : > { %2149 = vmatmul.mubr.msk.f32.gmra.mrb[102].mxu1 %vm415_vm0, %v2895_v49 }
 0x14b   : > { %1471 = vmatprep.mubr.f32.mxu1 %v2487_v0 }
 0x14c   : > { %2218 = vmatmul.mubr.msk.f32.gmra.mrb[104].mxu0 %vm415_vm0, %v2829_v40 }
 0x14d   : > { %2220 = vmatprep.mubr.msk.f32.mxu0 %vm415_vm0, %v2840_v43 }
 0x14e   : > { %2150 = vmatmul.mubr.msk.f32.gmra.mrb[104].mxu1 %vm415_vm0, %v2906_v50 }
 0x14f   : > { %v536_v31 = vpop.f32.mrb[0].mxu0  ;;  %1477 = vmatprep.mubr.f32.mxu1 %v2487_v0 }
 0x150   : > { %1663 = vst [vmem:[%s3193_s18] sm:$0xff] %v536_v31  ;;  %v538_v54 = vpop.f32.mrb[1].mxu0  ;;  %2221 = vmatmul.mubr.msk.f32.gmra.mrb[106].mxu0 %vm415_vm0, %v2851_v44 }
 0x151   : > { %1664 = vst [vmem:[%s3193_s18 + $0x8] sm:$0xff] %v538_v54  ;;  %v620_v2 = vpop.f32.mrb[0].mxu1  ;;  %2223 = vmatprep.mubr.msk.f32.mxu0 %vm415_vm0, %v2862_v45 }
 0x152   : > { %1845 = vst [vmem:[%s3193_s18 + $0x5b0] sm:$0xff] %v620_v2  ;;  %v622_v15 = vpop.f32.mrb[1].mxu1  ;;  %2151 = vmatmul.mubr.msk.f32.gmra.mrb[106].mxu1 %vm415_vm0, %v2921_v56 }
 0x153   : > { %v542_v25 = vpop.f32.mrb[2].mxu0  ;;  %1846 = vst [vmem:[%s3193_s18 + $0x5b8] sm:$0xff] %v622_v15  ;;  %1483 = vmatprep.mubr.f32.mxu1 %v2487_v0 }
 0x154   : > { %1676 = vst [vmem:[%s3193_s18 + $0x68] sm:$0xff] %v542_v25  ;;  %v544_v33 = vpop.f32.mrb[3].mxu0  ;;  %2224 = vmatmul.mubr.msk.f32.gmra.mrb[108].mxu0 %vm415_vm0, %v2873_v46 }
 0x155   : > { %1677 = vst [vmem:[%s3193_s18 + $0x70] sm:$0xff] %v544_v33  ;;  %v626_v34 = vpop.f32.mrb[2].mxu1  ;;  %2226 = vmatprep.mubr.msk.f32.mxu0 %vm415_vm0, %v2884_v48 }
 0x156   : > { %1858 = vst [vmem:[%s3193_s18 + $0x618] sm:$0xff] %v626_v34  ;;  %v628_v35 = vpop.f32.mrb[3].mxu1  ;;  %2152 = vmatmul.mubr.msk.f32.gmra.mrb[108].mxu1 %vm415_vm0, %v2734_v47 }
 0x157   : > { %v548_v36 = vpop.f32.mrb[4].mxu0  ;;  %1859 = vst [vmem:[%s3193_s18 + $0x620] sm:$0xff] %v628_v35  ;;  %1489 = vmatprep.mubr.f32.mxu1 %v2487_v0 }
 0x158   : > { %1689 = vst [vmem:[%s3193_s18 + $0xd0] sm:$0xff] %v548_v36  ;;  %v550_v37 = vpop.f32.mrb[5].mxu0  ;;  %2227 = vmatmul.mubr.msk.f32.gmra.mrb[110].mxu0 %vm415_vm0, %v2895_v49 }
 0x159   : > { %1690 = vst [vmem:[%s3193_s18 + $0xd8] sm:$0xff] %v550_v37  ;;  %v632_v38 = vpop.f32.mrb[4].mxu1  ;;  %2229 = vmatprep.mubr.msk.f32.mxu0 %vm415_vm0, %v2906_v50 }
 0x15a   : > { %1871 = vst [vmem:[%s3193_s18 + $0x680] sm:$0xff] %v632_v38  ;;  %v634_v39 = vpop.f32.mrb[5].mxu1  ;;  %2153 = vmatmul.mubr.msk.f32.gmra.mrb[110].mxu1 %vm415_vm0, %v2757_v60 }
 0x15b   : > { %v554_v40 = vpop.f32.mrb[6].mxu0  ;;  %1872 = vst [vmem:[%s3193_s18 + $0x688] sm:$0xff] %v634_v39  ;;  %1495 = vmatprep.mubr.f32.mxu1 %v2487_v0 }
 0x15c   : > { %1702 = vst [vmem:[%s3193_s18 + $0x138] sm:$0xff] %v554_v40  ;;  %v556_v41 = vpop.f32.mrb[7].mxu0  ;;  %2230 = vmatmul.mubr.msk.f32.gmra.mrb[112].mxu0 %vm415_vm0, %v2921_v56 }
 0x15d   : > { %1703 = vst [vmem:[%s3193_s18 + $0x140] sm:$0xff] %v556_v41  ;;  %v638_v42 = vpop.f32.mrb[6].mxu1  ;;  %2232 = vmatprep.mubr.msk.f32.mxu0 %vm415_vm0, %v2734_v47 }
 0x15e   : > { %1884 = vst [vmem:[%s3193_s18 + $0x6e8] sm:$0xff] %v638_v42  ;;  %v640_v43 = vpop.f32.mrb[7].mxu1  ;;  %2154 = vmatmul.mubr.msk.f32.gmra.mrb[112].mxu1 %vm415_vm0, %v2778_v9 }
 0x15f   : > { %v560_v44 = vpop.f32.mrb[8].mxu0  ;;  %1885 = vst [vmem:[%s3193_s18 + $0x6f0] sm:$0xff] %v640_v43  ;;  %1501 = vmatprep.mubr.f32.mxu1 %v2487_v0 }
 0x160   : > { %1715 = vst [vmem:[%s3193_s18 + $0x1a0] sm:$0xff] %v560_v44  ;;  %v562_v45 = vpop.f32.mrb[9].mxu0  ;;  %2233 = vmatmul.mubr.msk.f32.gmra.mrb[114].mxu0 %vm415_vm0, %v2757_v60 }
 0x161   : > { %1716 = vst [vmem:[%s3193_s18 + $0x1a8] sm:$0xff] %v562_v45  ;;  %v709_v47 = vpop.f32.mrb[8].mxu1  ;;  %2235 = vmatprep.mubr.msk.f32.mxu0 %vm415_vm0, %v2778_v9 }
 0x162   : > { %1665 = vst [vmem:[%s3193_s18 + $0x10] sm:$0xff] %v709_v47  ;;  %v711_v46 = vpop.f32.mrb[9].mxu1  ;;  %2155 = vmatmul.mubr.msk.f32.gmra.mrb[114].mxu1 %vm415_vm0, %v2802_v20 }
 0x163   : > { %v566_v0 = vpop.f32.mrb[10].mxu0  ;;  %1666 = vst [vmem:[%s3193_s18 + $0x18] sm:$0xff] %v711_v46 }
 0x164   : > { %1728 = vst [vmem:[%s3193_s18 + $0x208] sm:$0xff] %v566_v0  ;;  %v568_v48 = vpop.f32.mrb[11].mxu0  ;;  %2236 = vmatmul.mubr.msk.f32.gmra.mrb[116].mxu0 %vm415_vm0, %v2802_v20 }
 0x165   : > { %1729 = vst [vmem:[%s3193_s18 + $0x210] sm:$0xff] %v568_v48  ;;  %v715_v60 = vpop.f32.mrb[10].mxu1 }
 0x166   : > { %1678 = vst [vmem:[%s3193_s18 + $0x78] sm:$0xff] %v715_v60  ;;  %v717_v9 = vpop.f32.mrb[11].mxu1 }
 0x167   : > { %v572_v49 = vpop.f32.mrb[12].mxu0  ;;  %1679 = vst [vmem:[%s3193_s18 + $0x80] sm:$0xff] %v717_v9 }
 0x168   : > { %1741 = vst [vmem:[%s3193_s18 + $0x270] sm:$0xff] %v572_v49  ;;  %v574_v50 = vpop.f32.mrb[13].mxu0 }
 0x169   : > { %1742 = vst [vmem:[%s3193_s18 + $0x278] sm:$0xff] %v574_v50  ;;  %v721_v51 = vpop.f32.mrb[12].mxu1 }
 0x16a   : > { %1691 = vst [vmem:[%s3193_s18 + $0xe0] sm:$0xff] %v721_v51  ;;  %v723_v52 = vpop.f32.mrb[13].mxu1 }
 0x16b   : > { %v578_v53 = vpop.f32.mrb[14].mxu0  ;;  %1692 = vst [vmem:[%s3193_s18 + $0xe8] sm:$0xff] %v723_v52 }
 0x16c   : > { %1754 = vst [vmem:[%s3193_s18 + $0x2d8] sm:$0xff] %v578_v53  ;;  %v580_v20 = vpop.f32.mrb[15].mxu0 }
 0x16d   : > { %1755 = vst [vmem:[%s3193_s18 + $0x2e0] sm:$0xff] %v580_v20  ;;  %v727_v55 = vpop.f32.mrb[14].mxu1 }
 0x16e   : > { %1704 = vst [vmem:[%s3193_s18 + $0x148] sm:$0xff] %v727_v55  ;;  %v729_v56 = vpop.f32.mrb[15].mxu1 }
 0x16f   : > { %v584_v57 = vpop.f32.mrb[16].mxu0  ;;  %1705 = vst [vmem:[%s3193_s18 + $0x150] sm:$0xff] %v729_v56 }
 0x170   : > { %1767 = vst [vmem:[%s3193_s18 + $0x340] sm:$0xff] %v584_v57  ;;  %v586_v58 = vpop.f32.mrb[17].mxu0 }
 0x171   : > { %1768 = vst [vmem:[%s3193_s18 + $0x348] sm:$0xff] %v586_v58  ;;  %v733_v59 = vpop.f32.mrb[16].mxu1 }
 0x172   : > { %1717 = vst [vmem:[%s3193_s18 + $0x1b0] sm:$0xff] %v733_v59  ;;  %v735_v61 = vpop.f32.mrb[17].mxu1 }
 0x173   : > { %v590_v62 = vpop.f32.mrb[18].mxu0  ;;  %1718 = vst [vmem:[%s3193_s18 + $0x1b8] sm:$0xff] %v735_v61 }
 0x174   : > { %1780 = vst [vmem:[%s3193_s18 + $0x3a8] sm:$0xff] %v590_v62  ;;  %v592_v63 = vpop.f32.mrb[19].mxu0 }
 0x175   : > { %1781 = vst [vmem:[%s3193_s18 + $0x3b0] sm:$0xff] %v592_v63  ;;  %v739_v1 = vpop.f32.mrb[18].mxu1 }
 0x176   : > { %1730 = vst [vmem:[%s3193_s18 + $0x218] sm:$0xff] %v739_v1  ;;  %v741_v3 = vpop.f32.mrb[19].mxu1 }
 0x177   : > { %v596_v4 = vpop.f32.mrb[20].mxu0  ;;  %1731 = vst [vmem:[%s3193_s18 + $0x220] sm:$0xff] %v741_v3 }
 0x178   : > { %1793 = vst [vmem:[%s3193_s18 + $0x410] sm:$0xff] %v596_v4  ;;  %v598_v5 = vpop.f32.mrb[21].mxu0 }
 0x179   : > { %1794 = vst [vmem:[%s3193_s18 + $0x418] sm:$0xff] %v598_v5  ;;  %v745_v6 = vpop.f32.mrb[20].mxu1 }
 0x17a   : > { %1743 = vst [vmem:[%s3193_s18 + $0x280] sm:$0xff] %v745_v6  ;;  %v747_v7 = vpop.f32.mrb[21].mxu1 }
 0x17b   : > { %v602_v8 = vpop.f32.mrb[22].mxu0  ;;  %1744 = vst [vmem:[%s3193_s18 + $0x288] sm:$0xff] %v747_v7 }
 0x17c   : > { %1806 = vst [vmem:[%s3193_s18 + $0x478] sm:$0xff] %v602_v8  ;;  %v604_v10 = vpop.f32.mrb[23].mxu0 }
 0x17d   : > { %1807 = vst [vmem:[%s3193_s18 + $0x480] sm:$0xff] %v604_v10  ;;  %v751_v11 = vpop.f32.mrb[22].mxu1 }
 0x17e   : > { %1756 = vst [vmem:[%s3193_s18 + $0x2e8] sm:$0xff] %v751_v11  ;;  %v753_v12 = vpop.f32.mrb[23].mxu1 }
 0x17f   : > { %v608_v13 = vpop.f32.mrb[24].mxu0  ;;  %1757 = vst [vmem:[%s3193_s18 + $0x2f0] sm:$0xff] %v753_v12 }
 0x180   : > { %1819 = vst [vmem:[%s3193_s18 + $0x4e0] sm:$0xff] %v608_v13  ;;  %v610_v14 = vpop.f32.mrb[25].mxu0 }
 0x181   : > { %1820 = vst [vmem:[%s3193_s18 + $0x4e8] sm:$0xff] %v610_v14  ;;  %v757_v16 = vpop.f32.mrb[24].mxu1 }
 0x182   : > { %1769 = vst [vmem:[%s3193_s18 + $0x350] sm:$0xff] %v757_v16  ;;  %v759_v17 = vpop.f32.mrb[25].mxu1 }
 0x183   : > { %v614_v18 = vpop.f32.mrb[26].mxu0  ;;  %1770 = vst [vmem:[%s3193_s18 + $0x358] sm:$0xff] %v759_v17 }
 0x184   : > { %1832 = vst [vmem:[%s3193_s18 + $0x548] sm:$0xff] %v614_v18  ;;  %v616_v19 = vpop.f32.mrb[27].mxu0 }
 0x185   : > { %1833 = vst [vmem:[%s3193_s18 + $0x550] sm:$0xff] %v616_v19  ;;  %v763_v21 = vpop.f32.mrb[26].mxu1 }
 0x186   : > { %1782 = vst [vmem:[%s3193_s18 + $0x3b8] sm:$0xff] %v763_v21  ;;  %v765_v22 = vpop.f32.mrb[27].mxu1 }
 0x187   : > { %v882_v23 = vpop.f32.mrb[28].mxu0  ;;  %1783 = vst [vmem:[%s3193_s18 + $0x3c0] sm:$0xff] %v765_v22 }
 0x188   : > { %1667 = vst [vmem:[%s3193_s18 + $0x20] sm:$0xff] %v882_v23  ;;  %v884_v24 = vpop.f32.mrb[29].mxu0 }
 0x189   : > { %1668 = vst [vmem:[%s3193_s18 + $0x28] sm:$0xff] %v884_v24  ;;  %v769_v26 = vpop.f32.mrb[28].mxu1 }
 0x18a   : > { %1795 = vst [vmem:[%s3193_s18 + $0x420] sm:$0xff] %v769_v26  ;;  %v771_v27 = vpop.f32.mrb[29].mxu1 }
 0x18b   : > { %v888_v28 = vpop.f32.mrb[30].mxu0  ;;  %1796 = vst [vmem:[%s3193_s18 + $0x428] sm:$0xff] %v771_v27 }
 0x18c   : > { %1680 = vst [vmem:[%s3193_s18 + $0x88] sm:$0xff] %v888_v28  ;;  %v890_v29 = vpop.f32.mrb[31].mxu0 }
 0x18d   : > { %1681 = vst [vmem:[%s3193_s18 + $0x90] sm:$0xff] %v890_v29  ;;  %v775_v30 = vpop.f32.mrb[30].mxu1 }
 0x18e   : > { %1808 = vst [vmem:[%s3193_s18 + $0x488] sm:$0xff] %v775_v30  ;;  %v777_v32 = vpop.f32.mrb[31].mxu1 }
 0x18f   : > { %v894_v31 = vpop.f32.mrb[32].mxu0  ;;  %1809 = vst [vmem:[%s3193_s18 + $0x490] sm:$0xff] %v777_v32 }
 0x190   : > { %1693 = vst [vmem:[%s3193_s18 + $0xf0] sm:$0xff] %v894_v31  ;;  %v896_v54 = vpop.f32.mrb[33].mxu0 }
 0x191   : > { %1694 = vst [vmem:[%s3193_s18 + $0xf8] sm:$0xff] %v896_v54  ;;  %v781_v2 = vpop.f32.mrb[32].mxu1 }
 0x192   : > { %1821 = vst [vmem:[%s3193_s18 + $0x4f0] sm:$0xff] %v781_v2  ;;  %v783_v15 = vpop.f32.mrb[33].mxu1 }
 0x193   : > { %v900_v25 = vpop.f32.mrb[34].mxu0  ;;  %1822 = vst [vmem:[%s3193_s18 + $0x4f8] sm:$0xff] %v783_v15 }
 0x194   : > { %1706 = vst [vmem:[%s3193_s18 + $0x158] sm:$0xff] %v900_v25  ;;  %v902_v33 = vpop.f32.mrb[35].mxu0 }
 0x195   : > { %1707 = vst [vmem:[%s3193_s18 + $0x160] sm:$0xff] %v902_v33  ;;  %v787_v34 = vpop.f32.mrb[34].mxu1 }
 0x196   : > { %1834 = vst [vmem:[%s3193_s18 + $0x558] sm:$0xff] %v787_v34  ;;  %v789_v35 = vpop.f32.mrb[35].mxu1 }
 0x197   : > { %v906_v36 = vpop.f32.mrb[36].mxu0  ;;  %1835 = vst [vmem:[%s3193_s18 + $0x560] sm:$0xff] %v789_v35 }
 0x198   : > { %1719 = vst [vmem:[%s3193_s18 + $0x1c0] sm:$0xff] %v906_v36  ;;  %v908_v37 = vpop.f32.mrb[37].mxu0 }
 0x199   : > { %1720 = vst [vmem:[%s3193_s18 + $0x1c8] sm:$0xff] %v908_v37  ;;  %v793_v38 = vpop.f32.mrb[36].mxu1 }
 0x19a   : > { %1847 = vst [vmem:[%s3193_s18 + $0x5c0] sm:$0xff] %v793_v38  ;;  %v795_v39 = vpop.f32.mrb[37].mxu1 }
 0x19b   : > { %v912_v40 = vpop.f32.mrb[38].mxu0  ;;  %1848 = vst [vmem:[%s3193_s18 + $0x5c8] sm:$0xff] %v795_v39 }
 0x19c   : > { %1732 = vst [vmem:[%s3193_s18 + $0x228] sm:$0xff] %v912_v40  ;;  %v914_v41 = vpop.f32.mrb[39].mxu0 }
 0x19d   : > { %1733 = vst [vmem:[%s3193_s18 + $0x230] sm:$0xff] %v914_v41  ;;  %v799_v42 = vpop.f32.mrb[38].mxu1 }
 0x19e   : > { %1860 = vst [vmem:[%s3193_s18 + $0x628] sm:$0xff] %v799_v42  ;;  %v801_v43 = vpop.f32.mrb[39].mxu1 }
 0x19f   : > { %v918_v44 = vpop.f32.mrb[40].mxu0  ;;  %1861 = vst [vmem:[%s3193_s18 + $0x630] sm:$0xff] %v801_v43 }
 0x1a0   : > { %1745 = vst [vmem:[%s3193_s18 + $0x290] sm:$0xff] %v918_v44  ;;  %v920_v45 = vpop.f32.mrb[41].mxu0 }
 0x1a1   : > { %1746 = vst [vmem:[%s3193_s18 + $0x298] sm:$0xff] %v920_v45  ;;  %v805_v47 = vpop.f32.mrb[40].mxu1 }
 0x1a2   : > { %1873 = vst [vmem:[%s3193_s18 + $0x690] sm:$0xff] %v805_v47  ;;  %v807_v46 = vpop.f32.mrb[41].mxu1 }
 0x1a3   : > { %v924_v0 = vpop.f32.mrb[42].mxu0  ;;  %1874 = vst [vmem:[%s3193_s18 + $0x698] sm:$0xff] %v807_v46 }
 0x1a4   : > { %1758 = vst [vmem:[%s3193_s18 + $0x2f8] sm:$0xff] %v924_v0  ;;  %v926_v48 = vpop.f32.mrb[43].mxu0 }
 0x1a5   : > { %1759 = vst [vmem:[%s3193_s18 + $0x300] sm:$0xff] %v926_v48  ;;  %v811_v60 = vpop.f32.mrb[42].mxu1 }
 0x1a6   : > { %1886 = vst [vmem:[%s3193_s18 + $0x6f8] sm:$0xff] %v811_v60  ;;  %v813_v9 = vpop.f32.mrb[43].mxu1 }
 0x1a7   : > { %v930_v49 = vpop.f32.mrb[44].mxu0  ;;  %1887 = vst [vmem:[%s3193_s18 + $0x700] sm:$0xff] %v813_v9 }
 0x1a8   : > { %1771 = vst [vmem:[%s3193_s18 + $0x360] sm:$0xff] %v930_v49  ;;  %v932_v50 = vpop.f32.mrb[45].mxu0 }
 0x1a9   : > { %1772 = vst [vmem:[%s3193_s18 + $0x368] sm:$0xff] %v932_v50  ;;  %v1055_v51 = vpop.f32.mrb[44].mxu1 }
 0x1aa   : > { %1669 = vst [vmem:[%s3193_s18 + $0x30] sm:$0xff] %v1055_v51  ;;  %v1057_v52 = vpop.f32.mrb[45].mxu1 }
 0x1ab   : > { %v936_v53 = vpop.f32.mrb[46].mxu0  ;;  %1670 = vst [vmem:[%s3193_s18 + $0x38] sm:$0xff] %v1057_v52 }
 0x1ac   : > { %1784 = vst [vmem:[%s3193_s18 + $0x3c8] sm:$0xff] %v936_v53  ;;  %v938_v20 = vpop.f32.mrb[47].mxu0 }
 0x1ad   : > { %1785 = vst [vmem:[%s3193_s18 + $0x3d0] sm:$0xff] %v938_v20  ;;  %v1061_v55 = vpop.f32.mrb[46].mxu1 }
 0x1ae   : > { %1682 = vst [vmem:[%s3193_s18 + $0x98] sm:$0xff] %v1061_v55  ;;  %v1063_v56 = vpop.f32.mrb[47].mxu1 }
 0x1af   : > { %v942_v57 = vpop.f32.mrb[48].mxu0  ;;  %1683 = vst [vmem:[%s3193_s18 + $0xa0] sm:$0xff] %v1063_v56 }
 0x1b0   : > { %1797 = vst [vmem:[%s3193_s18 + $0x430] sm:$0xff] %v942_v57  ;;  %v944_v58 = vpop.f32.mrb[49].mxu0 }
 0x1b1   : > { %1798 = vst [vmem:[%s3193_s18 + $0x438] sm:$0xff] %v944_v58  ;;  %v1067_v59 = vpop.f32.mrb[48].mxu1 }
 0x1b2   : > { %1695 = vst [vmem:[%s3193_s18 + $0x100] sm:$0xff] %v1067_v59  ;;  %v1069_v61 = vpop.f32.mrb[49].mxu1 }
 0x1b3   : > { %v948_v62 = vpop.f32.mrb[50].mxu0  ;;  %1696 = vst [vmem:[%s3193_s18 + $0x108] sm:$0xff] %v1069_v61 }
 0x1b4   : > { %1810 = vst [vmem:[%s3193_s18 + $0x498] sm:$0xff] %v948_v62  ;;  %v950_v63 = vpop.f32.mrb[51].mxu0 }
 0x1b5   : > { %1811 = vst [vmem:[%s3193_s18 + $0x4a0] sm:$0xff] %v950_v63  ;;  %v1073_v1 = vpop.f32.mrb[50].mxu1 }
 0x1b6   : > { %1708 = vst [vmem:[%s3193_s18 + $0x168] sm:$0xff] %v1073_v1  ;;  %v1075_v3 = vpop.f32.mrb[51].mxu1 }
 0x1b7   : > { %v954_v4 = vpop.f32.mrb[52].mxu0  ;;  %1709 = vst [vmem:[%s3193_s18 + $0x170] sm:$0xff] %v1075_v3 }
 0x1b8   : > { %1823 = vst [vmem:[%s3193_s18 + $0x500] sm:$0xff] %v954_v4  ;;  %v956_v5 = vpop.f32.mrb[53].mxu0 }
 0x1b9   : > { %1824 = vst [vmem:[%s3193_s18 + $0x508] sm:$0xff] %v956_v5  ;;  %v1079_v6 = vpop.f32.mrb[52].mxu1 }
 0x1ba   : > { %1721 = vst [vmem:[%s3193_s18 + $0x1d0] sm:$0xff] %v1079_v6  ;;  %v1081_v7 = vpop.f32.mrb[53].mxu1 }
 0x1bb   : > { %v960_v8 = vpop.f32.mrb[54].mxu0  ;;  %1722 = vst [vmem:[%s3193_s18 + $0x1d8] sm:$0xff] %v1081_v7 }
 0x1bc   : > { %1836 = vst [vmem:[%s3193_s18 + $0x568] sm:$0xff] %v960_v8  ;;  %v962_v10 = vpop.f32.mrb[55].mxu0 }
 0x1bd   : > { %1837 = vst [vmem:[%s3193_s18 + $0x570] sm:$0xff] %v962_v10  ;;  %v1085_v11 = vpop.f32.mrb[54].mxu1 }
 0x1be   : > { %1734 = vst [vmem:[%s3193_s18 + $0x238] sm:$0xff] %v1085_v11  ;;  %v1087_v12 = vpop.f32.mrb[55].mxu1 }
 0x1bf   : > { %v966_v13 = vpop.f32.mrb[56].mxu0  ;;  %1735 = vst [vmem:[%s3193_s18 + $0x240] sm:$0xff] %v1087_v12 }
 0x1c0   : > { %1849 = vst [vmem:[%s3193_s18 + $0x5d0] sm:$0xff] %v966_v13  ;;  %v968_v14 = vpop.f32.mrb[57].mxu0 }
 0x1c1   : > { %1850 = vst [vmem:[%s3193_s18 + $0x5d8] sm:$0xff] %v968_v14  ;;  %v1091_v16 = vpop.f32.mrb[56].mxu1 }
 0x1c2   : > { %1747 = vst [vmem:[%s3193_s18 + $0x2a0] sm:$0xff] %v1091_v16  ;;  %v1093_v17 = vpop.f32.mrb[57].mxu1 }
 0x1c3   : > { %v972_v18 = vpop.f32.mrb[58].mxu0  ;;  %1748 = vst [vmem:[%s3193_s18 + $0x2a8] sm:$0xff] %v1093_v17 }
 0x1c4   : > { %1862 = vst [vmem:[%s3193_s18 + $0x638] sm:$0xff] %v972_v18  ;;  %v974_v19 = vpop.f32.mrb[59].mxu0 }
 0x1c5   : > { %1863 = vst [vmem:[%s3193_s18 + $0x640] sm:$0xff] %v974_v19  ;;  %v1097_v21 = vpop.f32.mrb[58].mxu1 }
 0x1c6   : > { %1760 = vst [vmem:[%s3193_s18 + $0x308] sm:$0xff] %v1097_v21  ;;  %v1099_v22 = vpop.f32.mrb[59].mxu1 }
 0x1c7   : > { %v978_v23 = vpop.f32.mrb[60].mxu0  ;;  %1761 = vst [vmem:[%s3193_s18 + $0x310] sm:$0xff] %v1099_v22 }
 0x1c8   : > { %1875 = vst [vmem:[%s3193_s18 + $0x6a0] sm:$0xff] %v978_v23  ;;  %v980_v24 = vpop.f32.mrb[61].mxu0 }
 0x1c9   : > { %1876 = vst [vmem:[%s3193_s18 + $0x6a8] sm:$0xff] %v980_v24  ;;  %v1103_v26 = vpop.f32.mrb[60].mxu1 }
 0x1ca   : > { %1773 = vst [vmem:[%s3193_s18 + $0x370] sm:$0xff] %v1103_v26  ;;  %v1105_v27 = vpop.f32.mrb[61].mxu1 }
 0x1cb   : > { %v984_v28 = vpop.f32.mrb[62].mxu0  ;;  %1774 = vst [vmem:[%s3193_s18 + $0x378] sm:$0xff] %v1105_v27 }
 0x1cc   : > { %1888 = vst [vmem:[%s3193_s18 + $0x708] sm:$0xff] %v984_v28  ;;  %v986_v29 = vpop.f32.mrb[63].mxu0 }
 0x1cd   : > { %1889 = vst [vmem:[%s3193_s18 + $0x710] sm:$0xff] %v986_v29  ;;  %v1109_v30 = vpop.f32.mrb[62].mxu1 }
 0x1ce   : > { %1786 = vst [vmem:[%s3193_s18 + $0x3d8] sm:$0xff] %v1109_v30  ;;  %v1111_v32 = vpop.f32.mrb[63].mxu1 }
 0x1cf   : > { %v1228_v31 = vpop.f32.mrb[64].mxu0  ;;  %1787 = vst [vmem:[%s3193_s18 + $0x3e0] sm:$0xff] %v1111_v32 }
 0x1d0   : > { %1671 = vst [vmem:[%s3193_s18 + $0x40] sm:$0xff] %v1228_v31  ;;  %v1230_v54 = vpop.f32.mrb[65].mxu0 }
 0x1d1   : > { %1672 = vst [vmem:[%s3193_s18 + $0x48] sm:$0xff] %v1230_v54  ;;  %v1115_v2 = vpop.f32.mrb[64].mxu1 }
 0x1d2   : > { %1799 = vst [vmem:[%s3193_s18 + $0x440] sm:$0xff] %v1115_v2  ;;  %v1117_v15 = vpop.f32.mrb[65].mxu1 }
 0x1d3   : > { %v1234_v25 = vpop.f32.mrb[66].mxu0  ;;  %1800 = vst [vmem:[%s3193_s18 + $0x448] sm:$0xff] %v1117_v15 }
 0x1d4   : > { %1684 = vst [vmem:[%s3193_s18 + $0xa8] sm:$0xff] %v1234_v25  ;;  %v1236_v33 = vpop.f32.mrb[67].mxu0 }
 0x1d5   : > { %1685 = vst [vmem:[%s3193_s18 + $0xb0] sm:$0xff] %v1236_v33  ;;  %v1121_v34 = vpop.f32.mrb[66].mxu1 }
 0x1d6   : > { %1812 = vst [vmem:[%s3193_s18 + $0x4a8] sm:$0xff] %v1121_v34  ;;  %v1123_v35 = vpop.f32.mrb[67].mxu1 }
 0x1d7   : > { %v1240_v36 = vpop.f32.mrb[68].mxu0  ;;  %1813 = vst [vmem:[%s3193_s18 + $0x4b0] sm:$0xff] %v1123_v35 }
 0x1d8   : > { %1697 = vst [vmem:[%s3193_s18 + $0x110] sm:$0xff] %v1240_v36  ;;  %v1242_v37 = vpop.f32.mrb[69].mxu0 }
 0x1d9   : > { %1698 = vst [vmem:[%s3193_s18 + $0x118] sm:$0xff] %v1242_v37  ;;  %v1127_v38 = vpop.f32.mrb[68].mxu1 }
 0x1da   : > { %1825 = vst [vmem:[%s3193_s18 + $0x510] sm:$0xff] %v1127_v38  ;;  %v1129_v39 = vpop.f32.mrb[69].mxu1 }
 0x1db   : > { %v1246_v40 = vpop.f32.mrb[70].mxu0  ;;  %1826 = vst [vmem:[%s3193_s18 + $0x518] sm:$0xff] %v1129_v39 }
 0x1dc   : > { %1710 = vst [vmem:[%s3193_s18 + $0x178] sm:$0xff] %v1246_v40  ;;  %v1248_v41 = vpop.f32.mrb[71].mxu0 }
 0x1dd   : > { %1711 = vst [vmem:[%s3193_s18 + $0x180] sm:$0xff] %v1248_v41  ;;  %v1133_v42 = vpop.f32.mrb[70].mxu1 }
 0x1de   : > { %1838 = vst [vmem:[%s3193_s18 + $0x578] sm:$0xff] %v1133_v42  ;;  %v1135_v43 = vpop.f32.mrb[71].mxu1 }
 0x1df   : > { %v1252_v44 = vpop.f32.mrb[72].mxu0  ;;  %1839 = vst [vmem:[%s3193_s18 + $0x580] sm:$0xff] %v1135_v43 }
 0x1e0   : > { %1723 = vst [vmem:[%s3193_s18 + $0x1e0] sm:$0xff] %v1252_v44  ;;  %v1254_v45 = vpop.f32.mrb[73].mxu0 }
 0x1e1   : > { %1724 = vst [vmem:[%s3193_s18 + $0x1e8] sm:$0xff] %v1254_v45  ;;  %v1139_v47 = vpop.f32.mrb[72].mxu1 }
 0x1e2   : > { %1851 = vst [vmem:[%s3193_s18 + $0x5e0] sm:$0xff] %v1139_v47  ;;  %v1141_v46 = vpop.f32.mrb[73].mxu1 }
 0x1e3   : > { %v1258_v0 = vpop.f32.mrb[74].mxu0  ;;  %1852 = vst [vmem:[%s3193_s18 + $0x5e8] sm:$0xff] %v1141_v46 }
 0x1e4   : > { %1736 = vst [vmem:[%s3193_s18 + $0x248] sm:$0xff] %v1258_v0  ;;  %v1260_v48 = vpop.f32.mrb[75].mxu0 }
 0x1e5   : > { %1737 = vst [vmem:[%s3193_s18 + $0x250] sm:$0xff] %v1260_v48  ;;  %v1145_v60 = vpop.f32.mrb[74].mxu1 }
 0x1e6   : > { %1864 = vst [vmem:[%s3193_s18 + $0x648] sm:$0xff] %v1145_v60  ;;  %v1147_v9 = vpop.f32.mrb[75].mxu1 }
 0x1e7   : > { %v1264_v49 = vpop.f32.mrb[76].mxu0  ;;  %1865 = vst [vmem:[%s3193_s18 + $0x650] sm:$0xff] %v1147_v9 }
 0x1e8   : > { %1749 = vst [vmem:[%s3193_s18 + $0x2b0] sm:$0xff] %v1264_v49  ;;  %v1266_v50 = vpop.f32.mrb[77].mxu0 }
 0x1e9   : > { %1750 = vst [vmem:[%s3193_s18 + $0x2b8] sm:$0xff] %v1266_v50  ;;  %v1151_v51 = vpop.f32.mrb[76].mxu1 }
 0x1ea   : > { %1877 = vst [vmem:[%s3193_s18 + $0x6b0] sm:$0xff] %v1151_v51  ;;  %v1153_v52 = vpop.f32.mrb[77].mxu1 }
 0x1eb   : > { %v1270_v53 = vpop.f32.mrb[78].mxu0  ;;  %1878 = vst [vmem:[%s3193_s18 + $0x6b8] sm:$0xff] %v1153_v52 }
 0x1ec   : > { %1762 = vst [vmem:[%s3193_s18 + $0x318] sm:$0xff] %v1270_v53  ;;  %v1272_v20 = vpop.f32.mrb[79].mxu0 }
 0x1ed   : > { %1763 = vst [vmem:[%s3193_s18 + $0x320] sm:$0xff] %v1272_v20  ;;  %v1157_v55 = vpop.f32.mrb[78].mxu1 }
 0x1ee   : > { %1890 = vst [vmem:[%s3193_s18 + $0x718] sm:$0xff] %v1157_v55  ;;  %v1159_v56 = vpop.f32.mrb[79].mxu1 }
 0x1ef   : > { %v1276_v57 = vpop.f32.mrb[80].mxu0  ;;  %1891 = vst [vmem:[%s3193_s18 + $0x720] sm:$0xff] %v1159_v56 }
 0x1f0   : > { %1775 = vst [vmem:[%s3193_s18 + $0x380] sm:$0xff] %v1276_v57  ;;  %v1278_v58 = vpop.f32.mrb[81].mxu0 }
 0x1f1   : > { %1776 = vst [vmem:[%s3193_s18 + $0x388] sm:$0xff] %v1278_v58  ;;  %v1401_v59 = vpop.f32.mrb[80].mxu1 }
 0x1f2   : > { %1673 = vst [vmem:[%s3193_s18 + $0x50] sm:$0xff] %v1401_v59  ;;  %v1403_v61 = vpop.f32.mrb[81].mxu1 }
 0x1f3   : > { %v1282_v62 = vpop.f32.mrb[82].mxu0  ;;  %1674 = vst [vmem:[%s3193_s18 + $0x58] sm:$0xff] %v1403_v61 }
 0x1f4   : > { %1788 = vst [vmem:[%s3193_s18 + $0x3e8] sm:$0xff] %v1282_v62  ;;  %v1284_v63 = vpop.f32.mrb[83].mxu0 }
 0x1f5   : > { %1789 = vst [vmem:[%s3193_s18 + $0x3f0] sm:$0xff] %v1284_v63  ;;  %v1407_v1 = vpop.f32.mrb[82].mxu1 }
 0x1f6   : > { %1686 = vst [vmem:[%s3193_s18 + $0xb8] sm:$0xff] %v1407_v1  ;;  %v1409_v3 = vpop.f32.mrb[83].mxu1 }
 0x1f7   : > { %v1288_v4 = vpop.f32.mrb[84].mxu0  ;;  %1687 = vst [vmem:[%s3193_s18 + $0xc0] sm:$0xff] %v1409_v3 }
 0x1f8   : > { %1801 = vst [vmem:[%s3193_s18 + $0x450] sm:$0xff] %v1288_v4  ;;  %v1290_v5 = vpop.f32.mrb[85].mxu0 }
 0x1f9   : > { %1802 = vst [vmem:[%s3193_s18 + $0x458] sm:$0xff] %v1290_v5  ;;  %v1413_v6 = vpop.f32.mrb[84].mxu1 }
 0x1fa   : > { %1699 = vst [vmem:[%s3193_s18 + $0x120] sm:$0xff] %v1413_v6  ;;  %v1415_v7 = vpop.f32.mrb[85].mxu1 }
 0x1fb   : > { %v1294_v8 = vpop.f32.mrb[86].mxu0  ;;  %1700 = vst [vmem:[%s3193_s18 + $0x128] sm:$0xff] %v1415_v7 }
 0x1fc   : > { %1814 = vst [vmem:[%s3193_s18 + $0x4b8] sm:$0xff] %v1294_v8  ;;  %v1296_v10 = vpop.f32.mrb[87].mxu0 }
 0x1fd   : > { %1815 = vst [vmem:[%s3193_s18 + $0x4c0] sm:$0xff] %v1296_v10  ;;  %v1419_v11 = vpop.f32.mrb[86].mxu1 }
 0x1fe   : > { %1712 = vst [vmem:[%s3193_s18 + $0x188] sm:$0xff] %v1419_v11  ;;  %v1421_v12 = vpop.f32.mrb[87].mxu1 }
 0x1ff   : > { %v1300_v13 = vpop.f32.mrb[88].mxu0  ;;  %1713 = vst [vmem:[%s3193_s18 + $0x190] sm:$0xff] %v1421_v12 }
 0x200   : > { %1827 = vst [vmem:[%s3193_s18 + $0x520] sm:$0xff] %v1300_v13  ;;  %v1302_v14 = vpop.f32.mrb[89].mxu0 }
 0x201   : > { %1828 = vst [vmem:[%s3193_s18 + $0x528] sm:$0xff] %v1302_v14  ;;  %v1425_v16 = vpop.f32.mrb[88].mxu1 }
 0x202   : > { %1725 = vst [vmem:[%s3193_s18 + $0x1f0] sm:$0xff] %v1425_v16  ;;  %v1427_v17 = vpop.f32.mrb[89].mxu1 }
 0x203   : > { %v1306_v18 = vpop.f32.mrb[90].mxu0  ;;  %1726 = vst [vmem:[%s3193_s18 + $0x1f8] sm:$0xff] %v1427_v17 }
 0x204   : > { %1840 = vst [vmem:[%s3193_s18 + $0x588] sm:$0xff] %v1306_v18  ;;  %v1308_v19 = vpop.f32.mrb[91].mxu0 }
 0x205   : > { %1841 = vst [vmem:[%s3193_s18 + $0x590] sm:$0xff] %v1308_v19  ;;  %v1431_v21 = vpop.f32.mrb[90].mxu1 }
 0x206   : > { %1738 = vst [vmem:[%s3193_s18 + $0x258] sm:$0xff] %v1431_v21  ;;  %v1433_v22 = vpop.f32.mrb[91].mxu1 }
 0x207   : > { %v1312_v23 = vpop.f32.mrb[92].mxu0  ;;  %1739 = vst [vmem:[%s3193_s18 + $0x260] sm:$0xff] %v1433_v22 }
 0x208   : > { %1853 = vst [vmem:[%s3193_s18 + $0x5f0] sm:$0xff] %v1312_v23  ;;  %v1314_v24 = vpop.f32.mrb[93].mxu0 }
 0x209   : > { %1854 = vst [vmem:[%s3193_s18 + $0x5f8] sm:$0xff] %v1314_v24  ;;  %v1437_v26 = vpop.f32.mrb[92].mxu1 }
 0x20a   : > { %1751 = vst [vmem:[%s3193_s18 + $0x2c0] sm:$0xff] %v1437_v26  ;;  %v1439_v27 = vpop.f32.mrb[93].mxu1 }
 0x20b   : > { %v1318_v28 = vpop.f32.mrb[94].mxu0  ;;  %1752 = vst [vmem:[%s3193_s18 + $0x2c8] sm:$0xff] %v1439_v27 }
 0x20c   : > { %1866 = vst [vmem:[%s3193_s18 + $0x658] sm:$0xff] %v1318_v28  ;;  %v1320_v29 = vpop.f32.mrb[95].mxu0 }
 0x20d   : > { %1867 = vst [vmem:[%s3193_s18 + $0x660] sm:$0xff] %v1320_v29  ;;  %v1443_v30 = vpop.f32.mrb[94].mxu1 }
 0x20e   : > { %1764 = vst [vmem:[%s3193_s18 + $0x328] sm:$0xff] %v1443_v30  ;;  %v1445_v32 = vpop.f32.mrb[95].mxu1 }
 0x20f   : > { %v1324_v31 = vpop.f32.mrb[96].mxu0  ;;  %1765 = vst [vmem:[%s3193_s18 + $0x330] sm:$0xff] %v1445_v32 }
 0x210   : > { %1879 = vst [vmem:[%s3193_s18 + $0x6c0] sm:$0xff] %v1324_v31  ;;  %v1326_v54 = vpop.f32.mrb[97].mxu0 }
 0x211   : > { %1880 = vst [vmem:[%s3193_s18 + $0x6c8] sm:$0xff] %v1326_v54  ;;  %v1449_v2 = vpop.f32.mrb[96].mxu1 }
 0x212   : > { %1777 = vst [vmem:[%s3193_s18 + $0x390] sm:$0xff] %v1449_v2  ;;  %v1451_v15 = vpop.f32.mrb[97].mxu1 }
 0x213   : > { %v1330_v25 = vpop.f32.mrb[98].mxu0  ;;  %1778 = vst [vmem:[%s3193_s18 + $0x398] sm:$0xff] %v1451_v15 }
 0x214   : > { %1892 = vst [vmem:[%s3193_s18 + $0x728] sm:$0xff] %v1330_v25  ;;  %v1332_v33 = vpop.f32.mrb[99].mxu0 }
 0x215   : > { %1893 = vst [vmem:[%s3193_s18 + $0x730] sm:$0xff] %v1332_v33  ;;  %v1455_v34 = vpop.f32.mrb[98].mxu1 }
 0x216   : > { %1790 = vst [vmem:[%s3193_s18 + $0x3f8] sm:$0xff] %v1455_v34  ;;  %v1457_v35 = vpop.f32.mrb[99].mxu1 }
 0x217   : > { %v2213_v36 = vpop.f32.mrb[100].mxu0  ;;  %1791 = vst [vmem:[%s3193_s18 + $0x400] sm:$0xff] %v1457_v35 }
 0x218   : > { %1688 = vst [vmem:[%s3193_s18 + $0xc8] sm:$0xff] %v2213_v36  ;;  %v1574_v37 = vpop.f32.mrb[101].mxu0 }
 0x219   : > { %1675 = vst [vmem:[%s3193_s18 + $0x60] sm:$0xff] %v1574_v37  ;;  %v1461_v38 = vpop.f32.mrb[100].mxu1 }
 0x21a   : > { %1803 = vst [vmem:[%s3193_s18 + $0x460] sm:$0xff] %v1461_v38  ;;  %v1463_v39 = vpop.f32.mrb[101].mxu1 }
 0x21b   : > { %v2216_v40 = vpop.f32.mrb[102].mxu0  ;;  %1804 = vst [vmem:[%s3193_s18 + $0x468] sm:$0xff] %v1463_v39 }
 0x21c   : > { %1714 = vst [vmem:[%s3193_s18 + $0x198] sm:$0xff] %v2216_v40  ;;  %v1584_v41 = vpop.f32.mrb[103].mxu0 }
 0x21d   : > { %1701 = vst [vmem:[%s3193_s18 + $0x130] sm:$0xff] %v1584_v41  ;;  %v1467_v42 = vpop.f32.mrb[102].mxu1 }
 0x21e   : > { %1816 = vst [vmem:[%s3193_s18 + $0x4c8] sm:$0xff] %v1467_v42  ;;  %v1469_v43 = vpop.f32.mrb[103].mxu1 }
 0x21f   : > { %v2219_v44 = vpop.f32.mrb[104].mxu0  ;;  %1817 = vst [vmem:[%s3193_s18 + $0x4d0] sm:$0xff] %v1469_v43 }
 0x220   : > { %1740 = vst [vmem:[%s3193_s18 + $0x268] sm:$0xff] %v2219_v44  ;;  %v1594_v45 = vpop.f32.mrb[105].mxu0 }
 0x221   : > { %1727 = vst [vmem:[%s3193_s18 + $0x200] sm:$0xff] %v1594_v45  ;;  %v1473_v47 = vpop.f32.mrb[104].mxu1 }
 0x222   : > { %1829 = vst [vmem:[%s3193_s18 + $0x530] sm:$0xff] %v1473_v47  ;;  %v1475_v46 = vpop.f32.mrb[105].mxu1 }
 0x223   : > { %v2222_v0 = vpop.f32.mrb[106].mxu0  ;;  %1830 = vst [vmem:[%s3193_s18 + $0x538] sm:$0xff] %v1475_v46 }
 0x224   : > { %1766 = vst [vmem:[%s3193_s18 + $0x338] sm:$0xff] %v2222_v0  ;;  %v1604_v48 = vpop.f32.mrb[107].mxu0 }
 0x225   : > { %1753 = vst [vmem:[%s3193_s18 + $0x2d0] sm:$0xff] %v1604_v48  ;;  %v1479_v60 = vpop.f32.mrb[106].mxu1 }
 0x226   : > { %1842 = vst [vmem:[%s3193_s18 + $0x598] sm:$0xff] %v1479_v60  ;;  %v1481_v9 = vpop.f32.mrb[107].mxu1 }
 0x227   : > { %v2225_v49 = vpop.f32.mrb[108].mxu0  ;;  %1843 = vst [vmem:[%s3193_s18 + $0x5a0] sm:$0xff] %v1481_v9 }
 0x228   : > { %1792 = vst [vmem:[%s3193_s18 + $0x408] sm:$0xff] %v2225_v49  ;;  %v1614_v50 = vpop.f32.mrb[109].mxu0 }
 0x229   : > { %1779 = vst [vmem:[%s3193_s18 + $0x3a0] sm:$0xff] %v1614_v50  ;;  %v1485_v51 = vpop.f32.mrb[108].mxu1 }
 0x22a   : > { %1855 = vst [vmem:[%s3193_s18 + $0x600] sm:$0xff] %v1485_v51  ;;  %v1487_v52 = vpop.f32.mrb[109].mxu1 }
 0x22b   : > { %v2228_v53 = vpop.f32.mrb[110].mxu0  ;;  %1856 = vst [vmem:[%s3193_s18 + $0x608] sm:$0xff] %v1487_v52 }
 0x22c   : > { %1818 = vst [vmem:[%s3193_s18 + $0x4d8] sm:$0xff] %v2228_v53  ;;  %v1624_v20 = vpop.f32.mrb[111].mxu0 }
 0x22d   : > { %1805 = vst [vmem:[%s3193_s18 + $0x470] sm:$0xff] %v1624_v20  ;;  %v1491_v55 = vpop.f32.mrb[110].mxu1 }
 0x22e   : > { %1868 = vst [vmem:[%s3193_s18 + $0x668] sm:$0xff] %v1491_v55  ;;  %v1493_v56 = vpop.f32.mrb[111].mxu1 }
 0x22f   : > { %v2231_v57 = vpop.f32.mrb[112].mxu0  ;;  %1869 = vst [vmem:[%s3193_s18 + $0x670] sm:$0xff] %v1493_v56 }
 0x230   : > { %1844 = vst [vmem:[%s3193_s18 + $0x5a8] sm:$0xff] %v2231_v57  ;;  %v1634_v58 = vpop.f32.mrb[113].mxu0 }
 0x231   : > { %1831 = vst [vmem:[%s3193_s18 + $0x540] sm:$0xff] %v1634_v58  ;;  %v1497_v59 = vpop.f32.mrb[112].mxu1 }
 0x232   : > { %1881 = vst [vmem:[%s3193_s18 + $0x6d0] sm:$0xff] %v1497_v59  ;;  %v1499_v61 = vpop.f32.mrb[113].mxu1 }
 0x233   : > { %v2234_v62 = vpop.f32.mrb[114].mxu0  ;;  %1882 = vst [vmem:[%s3193_s18 + $0x6d8] sm:$0xff] %v1499_v61  ;;  %1904 = sbr.rel (!%p3548_p8) target bundleno = 600 (0x258), region = 44 }
 0x234   : > { %1870 = vst [vmem:[%s3193_s18 + $0x678] sm:$0xff] %v2234_v62  ;;  %v1644_v63 = vpop.f32.mrb[115].mxu0 }
 0x235   : > { %1857 = vst [vmem:[%s3193_s18 + $0x610] sm:$0xff] %v1644_v63  ;;  %v1503_v1 = vpop.f32.mrb[114].mxu1 }
 0x236   : > { %1894 = vst [vmem:[%s3193_s18 + $0x738] sm:$0xff] %v1503_v1  ;;  %v1505_v3 = vpop.f32.mrb[115].mxu1 }
 0x237   : > { %v2237_v4 = vpop.f32.mrb[116].mxu0  ;;  %1895 = vst [vmem:[%s3193_s18 + $0x740] sm:$0xff] %v1505_v3 }
 0x238   : > { %1896 = vst [vmem:[%s3193_s18 + $0x748] sm:$0xff] %v2237_v4  ;;  %v1654_v5 = vpop.f32.mrb[117].mxu0 }
 0x239   : > { %1883 = vst [vmem:[%s3193_s18 + $0x6e0] sm:$0xff] %v1654_v5 }
 0x23a   : > { %s3563_s29 = smov (!%p1907_p4, %s1906_s29), 13 }
 0x23b   : > { %s3472_s6 = smul.u32 2304, %s3563_s29 }
 0x23d   : > { %s1911_s8 = ssub.s32 29952, %s3472_s6 }
 0x23e   : > { %1912 = vsyncadd %s1898_s21, %s1911_s8  ;;  %p2174_p2 = scmp.ne.s32.totalorder %s3472_s6, 0  ;;  %s2183_s25 = smul.u32 1664, %s2471_s15 }
 0x23f   : > { %s2176_s9 = sshll.u32 %s3563_s29, 3  ;;  %s1920_s24 = sshll.u32 %s3193_s18, 4  ;;  %s3486_s24 = int_to_ptr.vmem [resolvable:$true] %s1920_s24 }
 0x240   : > { %s3484_s10 = scalar_lea.hbm %s3542_s3, %s2183_s25  ;;  %s2393_s28 = scalar_lea.vmem %s3486_s24, %s3472_s6 }
 0x241   : > { %p2394_p5 = scmp.ne.s32.totalorder %s3486_s24, %s2393_s28  ;;  %s2488_s5 = smov [#allocation7]  }
 0x242   : > { %s2397_s22 = sshll.u32 %s2488_s5, 4  ;;  %s2398_s22 = int_to_ptr.vmem [resolvable:$false] %s2397_s22 }
 0x243   : > { %p2395_p6 = pnand %p2394_p5, %p2174_p2  ;;  %s2399_s15 = scalar_lea.vmem %s2398_s22, 59904 }
 0x244   : > { %p2400_p9 = scmp.lt.s32.totalorder %s3486_s24, %s2398_s22  ;;  %p2401_p11 = scmp.lt.s32.totalorder %s2399_s15, %s2393_s28 }
 0x245   : > { %p2396_p7 = pneg %p2395_p6 }
 0x246   : > { %p2402_p12 = por %p2401_p11, %p2400_p9 }
 0x248   : > { %p2403_p3 = pnand %p2402_p12, %p2396_p7 }
 0x24a   : > { %2406 = shalt.err (!%p2403_p3)
}
 0x24b   : > { %s2407_s11 = scalar_lea.hbm %s3484_s10, %s3472_s6  ;;  %s2411_s23 = scalar_lea.hbm %s3542_s3, 57600 }
 0x24c   : > { %p2408_p10 = scmp.ne.s32.totalorder %s3484_s10, %s2407_s11  ;;  %p2412_p1 = scmp.lt.u32.totalorder %s3484_s10, %s3542_s3 }
 0x24d   : > { %p2413_p8 = scmp.lt.u32.totalorder %s2411_s23, %s2407_s11  ;;  %p2415_p5 = scmp.lt.u32.totalorder %s2407_s11, %s3484_s10 }
 0x24e   : > { %p2409_p0 = pnand %p2408_p10, %p2174_p2 }
 0x24f   : > { %p2414_p4 = por %p2413_p8, %p2412_p1 }
 0x250   : > { %p2410_p13 = pneg %p2409_p0 }
 0x251   : > { %p2416_p6 = por %p2415_p5, %p2414_p4 }
 0x253   : > { %p2417_p7 = pnand %p2416_p6, %p2410_p13 }
 0x255   : > { %2420 = shalt.err (!%p2417_p7)
}
 0x256   : > { %s2489_s4 = smov 1664   ;;  %s2490_s7 = smov 3200  }
 0x257   : > { %1926 = dma.vmem_to_hbm [thread:$0]  (%p2174_p2), %s3486_s24, %s3472_s6, %s3484_s10, %s1898_s21, %s2489_s4, %s2490_s7, %s2176_s9  }
 0x258 PF: > { %s1935_s28 = sand.u32 1, %s2459_s12   ;;  %p3549_p9 = scmp.ne.s32.totalorder %s3547_s27, 0 }
 0x259   : > { %p3550_p11 = scmp.ge.s32.totalorder %s2479_s17, 2  ;;  %s1936_s5 = scalar_lea.sflag [#allocation4], %s1935_s28 }
 0x25b   : > { %p2278_p12 = pnand %p3550_p11, %p3549_p9 }
 0x25d   : > { %2454 = dma.done.wait (!%p2278_p12), %s1936_s5, 29952  }
 0x25e   : > { %2456 = vsyncadd (!%p2278_p12), %s1936_s5, 4294937344  ;;  %s22_s17 = sadd.s32 1, %s2479_s17   ;;  %s3551_s12 = smov %s2463_s13 }
 0x25f   : > { %p19_p3 = scmp.ge.s32.totalorder %s22_s17, 4   ;;  %s3552_s13 = smov %s2467_s14 }
 0x260   : > { %s3553_s14 = smov %s2567_s26  ;;  %s3554_s15 = smov %s2475_s16 }
 0x261   : > { %s3555_s16 = smov %s3557_s20  ;;  %21 = sbr.rel (!%p19_p3) target bundleno = 8 (0x8), region = 90 }
 0x268   :  { %1941 = vsyncpa [#allocation3], 1 }
 0x269   :  { %1943 = vsyncpa [#allocation3 + $0x1], 1 }
 0x26a   :  { %1944 = vsyncpa [#allocation6], 1 }
 0x26b   :  { %1946 = vsyncpa [#allocation6 + $0x1], 1 }
 0x26c   :  { %1947 = vsyncpa [#allocation4], 1 }
 0x26d   :  { %1949 = vsyncpa [#allocation4 + $0x1], 1 }

</bundles_post_ra>
